<compile_context>
chip_gen: v7x
topology: tpu7x:2x2x1
jax: 0.10.0
libtpu: 0.0.40
codegen_flags: <defaults>
</compile_context>

<pallas_src>
import functools

import jax
import jax.numpy as jnp
from jax.experimental import pallas as pl
from jax.experimental.pallas import tpu as pltpu

NEG_SLOPE = 0.01   # torch.nn.LeakyReLU() default negative_slope (module uses default)
TM_MAX = 2048      # max lane tile for the M (=B*OH*OW) dimension


# ----------------------------------------------------------------------------
# Pallas kernel: out(N, tm) = act( W^T(N, K) @ X^T(K, tm) + b(N, 1) )
# ----------------------------------------------------------------------------
def _wt_x_bias_act_kernel(w_ref, x_ref, b_ref, o_ref, *, leaky):
    acc = jnp.dot(w_ref[...], x_ref[...], preferred_element_type=jnp.float32)
    acc = acc + b_ref[...]                       # (N, 1) broadcast along lanes
    if leaky:
        acc = jnp.where(acc >= 0, acc, NEG_SLOPE * acc)
    o_ref[...] = acc.astype(o_ref.dtype)


def _pick_m_tiling(m, tm_max=TM_MAX):
    """Pick a lane tile for M: full-array block if small (no padding needed),
    else the largest multiple-of-128 tile <= tm_max dividing the padded M."""
    if m <= tm_max:
        return m, m                               # (tm, m_pad): single block
    m_pad = pl.cdiv(m, 128) * 128
    for k in range(tm_max // 128, 0, -1):
        if m_pad % (128 * k) == 0:
            return 128 * k, m_pad
    return 128, m_pad                             # unreachable (128 always divides)


def tmatmul_bias_act(wT, xT, b, *, leaky, out_dtype):
    """wT: (N, K), xT: (K, M), b: (N,) -> (N, M) = act(wT @ xT + b)."""
    N, K = wT.shape
    K2, M = xT.shape
    assert K == K2
    tm, m_pad = _pick_m_tiling(M)
    x_in = xT if m_pad == M else jnp.pad(xT, ((0, 0), (0, m_pad - M)))

    out = pl.pallas_call(
        functools.partial(_wt_x_bias_act_kernel, leaky=leaky),
        out_shape=jax.ShapeDtypeStruct((N, m_pad), out_dtype),
        grid=(m_pad // tm,),
        in_specs=[
            pl.BlockSpec((N, K), lambda i: (0, 0)),    # weights: resident
            pl.BlockSpec((K, tm), lambda i: (0, i)),   # activations: tiled over lanes
            pl.BlockSpec((N, 1), lambda i: (0, 0)),    # bias: resident
        ],
        out_specs=pl.BlockSpec((N, tm), lambda i: (0, i)),
        compiler_params=pltpu.CompilerParams(
            dimension_semantics=("parallel",),         # shard M across TCs on v7x
            vmem_limit_bytes=32 * 1024 * 1024,
        ),
    )(wT.astype(jnp.bfloat16), x_in.astype(jnp.bfloat16),
      b.reshape(N, 1).astype(jnp.float32))
    return out if m_pad == M else out[:, :M]


# ----------------------------------------------------------------------------
# Transposed im2col (XLA glue, fused under jit) + conv layer wrapper
# ----------------------------------------------------------------------------
def _im2col_T(x_nchw, kh=4, kw=4, stride=2, pad=1):
    """x: (B, C, H, W) -> X^T of shape (kh*kw*C, B*OH*OW); K ordered (kh, kw, c)."""
    B, C, H, W = x_nchw.shape
    OH = (H + 2 * pad - kh) // stride + 1
    OW = (W + 2 * pad - kw) // stride + 1
    xp = jnp.pad(x_nchw, ((0, 0), (0, 0), (pad, pad), (pad, pad)))
    taps = [xp[:, :, i:i + stride * OH:stride, j:j + stride * OW:stride]
            for i in range(kh) for j in range(kw)]           # each (B, C, OH, OW)
    p = jnp.stack(taps, axis=0)                              # (kh*kw, B, C, OH, OW)
    p = p.transpose(0, 2, 1, 3, 4)                           # (kh*kw, C, B, OH, OW)
    return p.reshape(kh * kw * C, B * OH * OW), OH, OW


def conv4x4_s2_lrelu(x_nchw, wT, b):
    """Conv2d(k=4, s=2, p=1) + LeakyReLU.  x NCHW, wT (Cout, 16*Cin), b (Cout,)."""
    B = x_nchw.shape[0]
    cout = wT.shape[0]
    xT, OH, OW = _im2col_T(x_nchw)                                          # (K, M)
    out = tmatmul_bias_act(wT, xT, b, leaky=True, out_dtype=jnp.bfloat16)   # (Cout, M)
    return out.reshape(cout, B, OH, OW).transpose(1, 0, 2, 3)               # NCHW


# ----------------------------------------------------------------------------
# Parameters (deterministic, synthetic) and forward pass matching _netD
# ----------------------------------------------------------------------------
def init_params(key, nc=3, ndf=4):
    chans = [nc, ndf, 2 * ndf, 4 * ndf, 8 * ndf, 16 * ndf]
    keys = jax.random.split(key, 6)
    convs = []
    for li in range(5):
        cin, cout = chans[li], chans[li + 1]
        wT = (jax.random.normal(keys[li], (cout, 4 * 4 * cin), jnp.float32)
              * 0.05).astype(jnp.bfloat16)
        convs.append((wT, jnp.zeros((cout,), jnp.float32)))
    feat = 9 * 3 * 16 * ndf
    lin_wT = (jax.random.normal(keys[5], (1, feat), jnp.float32)
              * 0.02).astype(jnp.bfloat16)
    return {"convs": convs, "lin_wT": lin_wT, "lin_b": jnp.zeros((1,), jnp.float32)}


def conv_stack(params, x_nchw):
    x = x_nchw.astype(jnp.bfloat16)
    for (wT, b) in params["convs"]:
        x = conv4x4_s2_lrelu(x, wT, b)
    return x                                          # (B, 16*ndf, 9, 3) NCHW


def netD_forward(params, x_nchw):
    x = conv_stack(params, x_nchw)
    B = x.shape[0]
    feat = x.shape[1] * x.shape[2] * x.shape[3]
    featsT = x.reshape(B, feat).T                     # NCHW flatten == torch .view
    out = tmatmul_bias_act(params["lin_wT"], featsT, params["lin_b"],
                           leaky=False, out_dtype=jnp.float32)   # (1, B)
    return out.T                                      # (B, 1)


# ----------------------------------------------------------------------------
# Pure-JAX f32 reference (lax.conv) used only as a sanity check
# ----------------------------------------------------------------------------
def reference_forward(params, x_nchw):
    x = x_nchw.astype(jnp.float32)
    for (wT, b) in params["convs"]:
        cout, K = wT.shape
        cin = K // 16
        w4 = wT.astype(jnp.float32).reshape(cout, 4, 4, cin).transpose(0, 3, 1, 2)
        x = jax.lax.conv_general_dilated(
            x, w4, window_strides=(2, 2), padding=((1, 1), (1, 1)),
            dimension_numbers=("NCHW", "OIHW", "NCHW"))
        x = x + b.reshape(1, -1, 1, 1)
        x = jnp.where(x >= 0, x, NEG_SLOPE * x)
    feats = x.reshape(x.shape[0], -1)
    return feats @ params["lin_wT"].astype(jnp.float32).T + params["lin_b"]


if __name__ == "__main__":
    key = jax.random.PRNGKey(0)
    k_par, k_inp = jax.random.split(key)

    nc, ndf, B = 3, 4, 2
    # Linear(9*3*16*ndf, 1) pins the conv-stack output to 9x3 -> input 288x96
    # (five stride-2 convs: 288->144->72->36->18->9, 96->48->24->12->6->3).
    x = jax.random.normal(k_inp, (B, nc, 288, 96), jnp.float32)
    params = init_params(k_par, nc=nc, ndf=ndf)

    out = jax.block_until_ready(jax.jit(netD_forward)(params, x))
    assert out.shape == (B, 1), out.shape
    assert out.dtype == jnp.float32

    # Sanity check vs. pure-JAX f32 reference (generous tolerance: bf16 MXU path).
    ref = jax.block_until_ready(jax.jit(reference_forward)(params, x))
    tol = max(0.1 * float(jnp.max(jnp.abs(ref))), 3e-3)
    assert float(jnp.max(jnp.abs(out - ref))) < tol, (out, ref)

    print("KERNEL_OK")
</pallas_src>

<mosaic_0001>
module attributes {stable_mosaic.version = 11 : i64} {
  func.func @_wt_x_bias_act_kernel(%arg0: i32, %arg1: memref<4x48xbf16, #tpu.memory_space<vmem>>, %arg2: memref<48x1536xbf16, #tpu.memory_space<vmem>>, %arg3: memref<4x1xf32, #tpu.memory_space<vmem>>, %arg4: memref<4x1536xbf16, #tpu.memory_space<vmem>>) attributes {dimension_semantics = [#tpu.dimension_semantics<parallel>], iteration_bounds = array<i64: 9>, scalar_prefetch = 0 : i64, scratch_operands = 0 : i64, tpu.core_type = #tpu.core_type<tc>, window_params = [{pipeline_mode = #tpu.pipeline_mode<synchronous>, transform_indices = @transform_0, window_bounds = array<i64: 4, 48>}, {transform_indices = @transform_1, window_bounds = array<i64: 48, 1536>}, {pipeline_mode = #tpu.pipeline_mode<synchronous>, transform_indices = @transform_2, window_bounds = array<i64: 4, 1>}, {transform_indices = @transform_3, window_bounds = array<i64: 4, 1536>}]} {
    %c0 = arith.constant 0 : index
    %c0_0 = arith.constant 0 : index
    %0 = vector.load %arg1[%c0, %c0_0] : memref<4x48xbf16, #tpu.memory_space<vmem>>, vector<4x48xbf16>
    %c0_1 = arith.constant 0 : index
    %c0_2 = arith.constant 0 : index
    %1 = vector.load %arg2[%c0_1, %c0_2] : memref<48x1536xbf16, #tpu.memory_space<vmem>>, vector<48x1536xbf16>
    %cst = arith.constant dense<0.000000e+00> : vector<4x1536xf32>
    %2 = tpu.matmul %0, %1, %cst {dimension_numbers = #tpu.dot_dimension_numbers<[1], [0], [0], [1], [0, 0, 1, 1], [], []>} : vector<4x48xbf16>, vector<48x1536xbf16>, vector<4x1536xf32> -> vector<4x1536xf32>
    %c0_3 = arith.constant 0 : index
    %c0_4 = arith.constant 0 : index
    %3 = vector.load %arg3[%c0_3, %c0_4] : memref<4x1xf32, #tpu.memory_space<vmem>>, vector<4x1xf32>
    %4 = vector.broadcast %3 : vector<4x1xf32> to vector<4x1536xf32>
    %5 = arith.addf %2, %4 : vector<4x1536xf32>
    %cst_5 = arith.constant 0.000000e+00 : f32
    %6 = vector.broadcast %cst_5 : f32 to vector<4x1536xf32>
    %7 = arith.cmpf oge, %5, %6 : vector<4x1536xf32>
    %cst_6 = arith.constant 0.00999999977 : f32
    %8 = vector.broadcast %cst_6 : f32 to vector<4x1536xf32>
    %9 = arith.mulf %8, %5 : vector<4x1536xf32>
    %10 = arith.select %7, %5, %9 : vector<4x1536xi1>, vector<4x1536xf32>
    %11 = arith.truncf %10 : vector<4x1536xf32> to vector<4x1536xbf16>
    %c0_7 = arith.constant 0 : index
    %c0_8 = arith.constant 0 : index
    %12 = vector.load %arg4[%c0_7, %c0_8] : memref<4x1536xbf16, #tpu.memory_space<vmem>>, vector<4x1536xbf16>
    tpu.vector_store %arg4[%c0_7, %c0_8], %11 {strides = array<i32>} : memref<4x1536xbf16, #tpu.memory_space<vmem>>, vector<4x1536xbf16>,
    return
  }
  func.func @transform_0(%arg0: i32) -> (i32, i32) {
    %c0_i32 = arith.constant 0 : i32
    %c0_i32_0 = arith.constant 0 : i32
    %c0_i32_1 = arith.constant 0 : i32
    return %c0_i32, %c0_i32_0 : i32, i32
  }
  func.func @transform_1(%arg0: i32) -> (i32, i32) {
    %c0_i32 = arith.constant 0 : i32
    %c0_i32_0 = arith.constant 0 : i32
    return %c0_i32, %arg0 : i32, i32
  }
  func.func @transform_2(%arg0: i32) -> (i32, i32) {
    %c0_i32 = arith.constant 0 : i32
    %c0_i32_0 = arith.constant 0 : i32
    %c0_i32_1 = arith.constant 0 : i32
    return %c0_i32, %c0_i32_0 : i32, i32
  }
  func.func @transform_3(%arg0: i32) -> (i32, i32) {
    %c0_i32 = arith.constant 0 : i32
    %c0_i32_0 = arith.constant 0 : i32
    return %c0_i32, %arg0 : i32, i32
  }
}

module attributes {stable_mosaic.version = 11 : i64} {
  func.func @_wt_x_bias_act_kernel(%arg0: i32, %arg1: memref<8x64xbf16, #tpu.memory_space<vmem>>, %arg2: memref<64x1152xbf16, #tpu.memory_space<vmem>>, %arg3: memref<8x1xf32, #tpu.memory_space<vmem>>, %arg4: memref<8x1152xbf16, #tpu.memory_space<vmem>>) attributes {dimension_semantics = [#tpu.dimension_semantics<parallel>], iteration_bounds = array<i64: 3>, scalar_prefetch = 0 : i64, scratch_operands = 0 : i64, tpu.core_type = #tpu.core_type<tc>, window_params = [{pipeline_mode = #tpu.pipeline_mode<synchronous>, transform_indices = @transform_0, window_bounds = array<i64: 8, 64>}, {transform_indices = @transform_1, window_bounds = array<i64: 64, 1152>}, {pipeline_mode = #tpu.pipeline_mode<synchronous>, transform_indices = @transform_2, window_bounds = array<i64: 8, 1>}, {transform_indices = @transform_3, window_bounds = array<i64: 8, 1152>}]} {
    %c0 = arith.constant 0 : index
    %c0_0 = arith.constant 0 : index
    %0 = vector.load %arg1[%c0, %c0_0] : memref<8x64xbf16, #tpu.memory_space<vmem>>, vector<8x64xbf16>
    %c0_1 = arith.constant 0 : index
    %c0_2 = arith.constant 0 : index
    %1 = vector.load %arg2[%c0_1, %c0_2] : memref<64x1152xbf16, #tpu.memory_space<vmem>>, vector<64x1152xbf16>
    %cst = arith.constant dense<0.000000e+00> : vector<8x1152xf32>
    %2 = tpu.matmul %0, %1, %cst {dimension_numbers = #tpu.dot_dimension_numbers<[1], [0], [0], [1], [0, 0, 1, 1], [], []>} : vector<8x64xbf16>, vector<64x1152xbf16>, vector<8x1152xf32> -> vector<8x1152xf32>
    %c0_3 = arith.constant 0 : index
    %c0_4 = arith.constant 0 : index
    %3 = vector.load %arg3[%c0_3, %c0_4] : memref<8x1xf32, #tpu.memory_space<vmem>>, vector<8x1xf32>
    %4 = vector.broadcast %3 : vector<8x1xf32> to vector<8x1152xf32>
    %5 = arith.addf %2, %4 : vector<8x1152xf32>
    %cst_5 = arith.constant 0.000000e+00 : f32
    %6 = vector.broadcast %cst_5 : f32 to vector<8x1152xf32>
    %7 = arith.cmpf oge, %5, %6 : vector<8x1152xf32>
    %cst_6 = arith.constant 0.00999999977 : f32
    %8 = vector.broadcast %cst_6 : f32 to vector<8x1152xf32>
    %9 = arith.mulf %8, %5 : vector<8x1152xf32>
    %10 = arith.select %7, %5, %9 : vector<8x1152xi1>, vector<8x1152xf32>
    %11 = arith.truncf %10 : vector<8x1152xf32> to vector<8x1152xbf16>
    %c0_7 = arith.constant 0 : index
    %c0_8 = arith.constant 0 : index
    %12 = vector.load %arg4[%c0_7, %c0_8] : memref<8x1152xbf16, #tpu.memory_space<vmem>>, vector<8x1152xbf16>
    tpu.vector_store %arg4[%c0_7, %c0_8], %11 {strides = array<i32>} : memref<8x1152xbf16, #tpu.memory_space<vmem>>, vector<8x1152xbf16>,
    return
  }
  func.func @transform_0(%arg0: i32) -> (i32, i32) {
    %c0_i32 = arith.constant 0 : i32
    %c0_i32_0 = arith.constant 0 : i32
    %c0_i32_1 = arith.constant 0 : i32
    return %c0_i32, %c0_i32_0 : i32, i32
  }
  func.func @transform_1(%arg0: i32) -> (i32, i32) {
    %c0_i32 = arith.constant 0 : i32
    %c0_i32_0 = arith.constant 0 : i32
    return %c0_i32, %arg0 : i32, i32
  }
  func.func @transform_2(%arg0: i32) -> (i32, i32) {
    %c0_i32 = arith.constant 0 : i32
    %c0_i32_0 = arith.constant 0 : i32
    %c0_i32_1 = arith.constant 0 : i32
    return %c0_i32, %c0_i32_0 : i32, i32
  }
  func.func @transform_3(%arg0: i32) -> (i32, i32) {
    %c0_i32 = arith.constant 0 : i32
    %c0_i32_0 = arith.constant 0 : i32
    return %c0_i32, %arg0 : i32, i32
  }
}

module attributes {stable_mosaic.version = 11 : i64} {
  func.func @_wt_x_bias_act_kernel(%arg0: i32, %arg1: memref<16x128xbf16, #tpu.memory_space<vmem>>, %arg2: memref<128x864xbf16, #tpu.memory_space<vmem>>, %arg3: memref<16x1xf32, #tpu.memory_space<vmem>>, %arg4: memref<16x864xbf16, #tpu.memory_space<vmem>>) attributes {dimension_semantics = [#tpu.dimension_semantics<parallel>], iteration_bounds = array<i64: 1>, scalar_prefetch = 0 : i64, scratch_operands = 0 : i64, tpu.core_type = #tpu.core_type<tc>, window_params = [{pipeline_mode = #tpu.pipeline_mode<synchronous>, transform_indices = @transform_0, window_bounds = array<i64: 16, 128>}, {transform_indices = @transform_1, window_bounds = array<i64: 128, 864>}, {pipeline_mode = #tpu.pipeline_mode<synchronous>, transform_indices = @transform_2, window_bounds = array<i64: 16, 1>}, {transform_indices = @transform_3, window_bounds = array<i64: 16, 864>}]} {
    %c0 = arith.constant 0 : index
    %c0_0 = arith.constant 0 : index
    %0 = vector.load %arg1[%c0, %c0_0] : memref<16x128xbf16, #tpu.memory_space<vmem>>, vector<16x128xbf16>
    %c0_1 = arith.constant 0 : index
    %c0_2 = arith.constant 0 : index
    %1 = vector.load %arg2[%c0_1, %c0_2] : memref<128x864xbf16, #tpu.memory_space<vmem>>, vector<128x864xbf16>
    %cst = arith.constant dense<0.000000e+00> : vector<16x864xf32>
    %2 = tpu.matmul %0, %1, %cst {dimension_numbers = #tpu.dot_dimension_numbers<[1], [0], [0], [1], [0, 0, 1, 1], [], []>} : vector<16x128xbf16>, vector<128x864xbf16>, vector<16x864xf32> -> vector<16x864xf32>
    %c0_3 = arith.constant 0 : index
    %c0_4 = arith.constant 0 : index
    %3 = vector.load %arg3[%c0_3, %c0_4] : memref<16x1xf32, #tpu.memory_space<vmem>>, vector<16x1xf32>
    %4 = vector.broadcast %3 : vector<16x1xf32> to vector<16x864xf32>
    %5 = arith.addf %2, %4 : vector<16x864xf32>
    %cst_5 = arith.constant 0.000000e+00 : f32
    %6 = vector.broadcast %cst_5 : f32 to vector<16x864xf32>
    %7 = arith.cmpf oge, %5, %6 : vector<16x864xf32>
    %cst_6 = arith.constant 0.00999999977 : f32
    %8 = vector.broadcast %cst_6 : f32 to vector<16x864xf32>
    %9 = arith.mulf %8, %5 : vector<16x864xf32>
    %10 = arith.select %7, %5, %9 : vector<16x864xi1>, vector<16x864xf32>
    %11 = arith.truncf %10 : vector<16x864xf32> to vector<16x864xbf16>
    %c0_7 = arith.constant 0 : index
    %c0_8 = arith.constant 0 : index
    %12 = vector.load %arg4[%c0_7, %c0_8] : memref<16x864xbf16, #tpu.memory_space<vmem>>, vector<16x864xbf16>
    tpu.vector_store %arg4[%c0_7, %c0_8], %11 {strides = array<i32>} : memref<16x864xbf16, #tpu.memory_space<vmem>>, vector<16x864xbf16>,
    return
  }
  func.func @transform_0(%arg0: i32) -> (i32, i32) {
    %c0_i32 = arith.constant 0 : i32
    %c0_i32_0 = arith.constant 0 : i32
    %c0_i32_1 = arith.constant 0 : i32
    return %c0_i32, %c0_i32_0 : i32, i32
  }
  func.func @transform_1(%arg0: i32) -> (i32, i32) {
    %c0_i32 = arith.constant 0 : i32
    %c0_i32_0 = arith.constant 0 : i32
    return %c0_i32, %arg0 : i32, i32
  }
  func.func @transform_2(%arg0: i32) -> (i32, i32) {
    %c0_i32 = arith.constant 0 : i32
    %c0_i32_0 = arith.constant 0 : i32
    %c0_i32_1 = arith.constant 0 : i32
    return %c0_i32, %c0_i32_0 : i32, i32
  }
  func.func @transform_3(%arg0: i32) -> (i32, i32) {
    %c0_i32 = arith.constant 0 : i32
    %c0_i32_0 = arith.constant 0 : i32
    return %c0_i32, %arg0 : i32, i32
  }
}

module attributes {stable_mosaic.version = 11 : i64} {
  func.func @_wt_x_bias_act_kernel(%arg0: i32, %arg1: memref<32x256xbf16, #tpu.memory_space<vmem>>, %arg2: memref<256x216xbf16, #tpu.memory_space<vmem>>, %arg3: memref<32x1xf32, #tpu.memory_space<vmem>>, %arg4: memref<32x216xbf16, #tpu.memory_space<vmem>>) attributes {dimension_semantics = [#tpu.dimension_semantics<parallel>], iteration_bounds = array<i64: 1>, scalar_prefetch = 0 : i64, scratch_operands = 0 : i64, tpu.core_type = #tpu.core_type<tc>, window_params = [{pipeline_mode = #tpu.pipeline_mode<synchronous>, transform_indices = @transform_0, window_bounds = array<i64: 32, 256>}, {transform_indices = @transform_1, window_bounds = array<i64: 256, 216>}, {pipeline_mode = #tpu.pipeline_mode<synchronous>, transform_indices = @transform_2, window_bounds = array<i64: 32, 1>}, {transform_indices = @transform_3, window_bounds = array<i64: 32, 216>}]} {
    %c0 = arith.constant 0 : index
    %c0_0 = arith.constant 0 : index
    %0 = vector.load %arg1[%c0, %c0_0] : memref<32x256xbf16, #tpu.memory_space<vmem>>, vector<32x256xbf16>
    %c0_1 = arith.constant 0 : index
    %c0_2 = arith.constant 0 : index
    %1 = vector.load %arg2[%c0_1, %c0_2] : memref<256x216xbf16, #tpu.memory_space<vmem>>, vector<256x216xbf16>
    %cst = arith.constant dense<0.000000e+00> : vector<32x216xf32>
    %2 = tpu.matmul %0, %1, %cst {dimension_numbers = #tpu.dot_dimension_numbers<[1], [0], [0], [1], [0, 0, 1, 1], [], []>} : vector<32x256xbf16>, vector<256x216xbf16>, vector<32x216xf32> -> vector<32x216xf32>
    %c0_3 = arith.constant 0 : index
    %c0_4 = arith.constant 0 : index
    %3 = vector.load %arg3[%c0_3, %c0_4] : memref<32x1xf32, #tpu.memory_space<vmem>>, vector<32x1xf32>
    %4 = vector.broadcast %3 : vector<32x1xf32> to vector<32x216xf32>
    %5 = arith.addf %2, %4 : vector<32x216xf32>
    %cst_5 = arith.constant 0.000000e+00 : f32
    %6 = vector.broadcast %cst_5 : f32 to vector<32x216xf32>
    %7 = arith.cmpf oge, %5, %6 : vector<32x216xf32>
    %cst_6 = arith.constant 0.00999999977 : f32
    %8 = vector.broadcast %cst_6 : f32 to vector<32x216xf32>
    %9 = arith.mulf %8, %5 : vector<32x216xf32>
    %10 = arith.select %7, %5, %9 : vector<32x216xi1>, vector<32x216xf32>
    %11 = arith.truncf %10 : vector<32x216xf32> to vector<32x216xbf16>
    %c0_7 = arith.constant 0 : index
    %c0_8 = arith.constant 0 : index
    %12 = vector.load %arg4[%c0_7, %c0_8] : memref<32x216xbf16, #tpu.memory_space<vmem>>, vector<32x216xbf16>
    tpu.vector_store %arg4[%c0_7, %c0_8], %11 {strides = array<i32>} : memref<32x216xbf16, #tpu.memory_space<vmem>>, vector<32x216xbf16>,
    return
  }
  func.func @transform_0(%arg0: i32) -> (i32, i32) {
    %c0_i32 = arith.constant 0 : i32
    %c0_i32_0 = arith.constant 0 : i32
    %c0_i32_1 = arith.constant 0 : i32
    return %c0_i32, %c0_i32_0 : i32, i32
  }
  func.func @transform_1(%arg0: i32) -> (i32, i32) {
    %c0_i32 = arith.constant 0 : i32
    %c0_i32_0 = arith.constant 0 : i32
    return %c0_i32, %arg0 : i32, i32
  }
  func.func @transform_2(%arg0: i32) -> (i32, i32) {
    %c0_i32 = arith.constant 0 : i32
    %c0_i32_0 = arith.constant 0 : i32
    %c0_i32_1 = arith.constant 0 : i32
    return %c0_i32, %c0_i32_0 : i32, i32
  }
  func.func @transform_3(%arg0: i32) -> (i32, i32) {
    %c0_i32 = arith.constant 0 : i32
    %c0_i32_0 = arith.constant 0 : i32
    return %c0_i32, %arg0 : i32, i32
  }
}

module attributes {stable_mosaic.version = 11 : i64} {
  func.func @_wt_x_bias_act_kernel(%arg0: i32, %arg1: memref<64x512xbf16, #tpu.memory_space<vmem>>, %arg2: memref<512x54xbf16, #tpu.memory_space<vmem>>, %arg3: memref<64x1xf32, #tpu.memory_space<vmem>>, %arg4: memref<64x54xbf16, #tpu.memory_space<vmem>>) attributes {dimension_semantics = [#tpu.dimension_semantics<parallel>], iteration_bounds = array<i64: 1>, scalar_prefetch = 0 : i64, scratch_operands = 0 : i64, tpu.core_type = #tpu.core_type<tc>, window_params = [{pipeline_mode = #tpu.pipeline_mode<synchronous>, transform_indices = @transform_0, window_bounds = array<i64: 64, 512>}, {transform_indices = @transform_1, window_bounds = array<i64: 512, 54>}, {pipeline_mode = #tpu.pipeline_mode<synchronous>, transform_indices = @transform_2, window_bounds = array<i64: 64, 1>}, {transform_indices = @transform_3, window_bounds = array<i64: 64, 54>}]} {
    %c0 = arith.constant 0 : index
    %c0_0 = arith.constant 0 : index
    %0 = vector.load %arg1[%c0, %c0_0] : memref<64x512xbf16, #tpu.memory_space<vmem>>, vector<64x512xbf16>
    %c0_1 = arith.constant 0 : index
    %c0_2 = arith.constant 0 : index
    %1 = vector.load %arg2[%c0_1, %c0_2] : memref<512x54xbf16, #tpu.memory_space<vmem>>, vector<512x54xbf16>
    %cst = arith.constant dense<0.000000e+00> : vector<64x54xf32>
    %2 = tpu.matmul %0, %1, %cst {dimension_numbers = #tpu.dot_dimension_numbers<[1], [0], [0], [1], [0, 0, 1, 1], [], []>} : vector<64x512xbf16>, vector<512x54xbf16>, vector<64x54xf32> -> vector<64x54xf32>
    %c0_3 = arith.constant 0 : index
    %c0_4 = arith.constant 0 : index
    %3 = vector.load %arg3[%c0_3, %c0_4] : memref<64x1xf32, #tpu.memory_space<vmem>>, vector<64x1xf32>
    %4 = vector.broadcast %3 : vector<64x1xf32> to vector<64x54xf32>
    %5 = arith.addf %2, %4 : vector<64x54xf32>
    %cst_5 = arith.constant 0.000000e+00 : f32
    %6 = vector.broadcast %cst_5 : f32 to vector<64x54xf32>
    %7 = arith.cmpf oge, %5, %6 : vector<64x54xf32>
    %cst_6 = arith.constant 0.00999999977 : f32
    %8 = vector.broadcast %cst_6 : f32 to vector<64x54xf32>
    %9 = arith.mulf %8, %5 : vector<64x54xf32>
    %10 = arith.select %7, %5, %9 : vector<64x54xi1>, vector<64x54xf32>
    %11 = arith.truncf %10 : vector<64x54xf32> to vector<64x54xbf16>
    %c0_7 = arith.constant 0 : index
    %c0_8 = arith.constant 0 : index
    %12 = vector.load %arg4[%c0_7, %c0_8] : memref<64x54xbf16, #tpu.memory_space<vmem>>, vector<64x54xbf16>
    tpu.vector_store %arg4[%c0_7, %c0_8], %11 {strides = array<i32>} : memref<64x54xbf16, #tpu.memory_space<vmem>>, vector<64x54xbf16>,
    return
  }
  func.func @transform_0(%arg0: i32) -> (i32, i32) {
    %c0_i32 = arith.constant 0 : i32
    %c0_i32_0 = arith.constant 0 : i32
    %c0_i32_1 = arith.constant 0 : i32
    return %c0_i32, %c0_i32_0 : i32, i32
  }
  func.func @transform_1(%arg0: i32) -> (i32, i32) {
    %c0_i32 = arith.constant 0 : i32
    %c0_i32_0 = arith.constant 0 : i32
    return %c0_i32, %arg0 : i32, i32
  }
  func.func @transform_2(%arg0: i32) -> (i32, i32) {
    %c0_i32 = arith.constant 0 : i32
    %c0_i32_0 = arith.constant 0 : i32
    %c0_i32_1 = arith.constant 0 : i32
    return %c0_i32, %c0_i32_0 : i32, i32
  }
  func.func @transform_3(%arg0: i32) -> (i32, i32) {
    %c0_i32 = arith.constant 0 : i32
    %c0_i32_0 = arith.constant 0 : i32
    return %c0_i32, %arg0 : i32, i32
  }
}

module attributes {stable_mosaic.version = 11 : i64} {
  func.func @_wt_x_bias_act_kernel(%arg0: i32, %arg1: memref<1x1728xbf16, #tpu.memory_space<vmem>>, %arg2: memref<1728x2xbf16, #tpu.memory_space<vmem>>, %arg3: memref<1x1xf32, #tpu.memory_space<vmem>>, %arg4: memref<1x2xf32, #tpu.memory_space<vmem>>) attributes {dimension_semantics = [#tpu.dimension_semantics<parallel>], iteration_bounds = array<i64: 1>, scalar_prefetch = 0 : i64, scratch_operands = 0 : i64, tpu.core_type = #tpu.core_type<tc>, window_params = [{pipeline_mode = #tpu.pipeline_mode<synchronous>, transform_indices = @transform_0, window_bounds = array<i64: 1, 1728>}, {transform_indices = @transform_1, window_bounds = array<i64: 1728, 2>}, {pipeline_mode = #tpu.pipeline_mode<synchronous>, transform_indices = @transform_2, window_bounds = array<i64: 1, 1>}, {transform_indices = @transform_3, window_bounds = array<i64: 1, 2>}]} {
    %c0 = arith.constant 0 : index
    %c0_0 = arith.constant 0 : index
    %0 = vector.load %arg1[%c0, %c0_0] : memref<1x1728xbf16, #tpu.memory_space<vmem>>, vector<1x1728xbf16>
    %c0_1 = arith.constant 0 : index
    %c0_2 = arith.constant 0 : index
    %1 = vector.load %arg2[%c0_1, %c0_2] : memref<1728x2xbf16, #tpu.memory_space<vmem>>, vector<1728x2xbf16>
    %cst = arith.constant dense<0.000000e+00> : vector<1x2xf32>
    %2 = tpu.matmul %0, %1, %cst {dimension_numbers = #tpu.dot_dimension_numbers<[1], [0], [0], [1], [0, 0, 1, 1], [], []>} : vector<1x1728xbf16>, vector<1728x2xbf16>, vector<1x2xf32> -> vector<1x2xf32>
    %c0_3 = arith.constant 0 : index
    %c0_4 = arith.constant 0 : index
    %3 = vector.load %arg3[%c0_3, %c0_4] : memref<1x1xf32, #tpu.memory_space<vmem>>, vector<1x1xf32>
    %4 = vector.broadcast %3 : vector<1x1xf32> to vector<1x2xf32>
    %5 = arith.addf %2, %4 : vector<1x2xf32>
    %c0_5 = arith.constant 0 : index
    %c0_6 = arith.constant 0 : index
    %6 = vector.load %arg4[%c0_5, %c0_6] : memref<1x2xf32, #tpu.memory_space<vmem>>, vector<1x2xf32>
    tpu.vector_store %arg4[%c0_5, %c0_6], %5 {strides = array<i32>} : memref<1x2xf32, #tpu.memory_space<vmem>>, vector<1x2xf32>,
    return
  }
  func.func @transform_0(%arg0: i32) -> (i32, i32) {
    %c0_i32 = arith.constant 0 : i32
    %c0_i32_0 = arith.constant 0 : i32
    %c0_i32_1 = arith.constant 0 : i32
    return %c0_i32, %c0_i32_0 : i32, i32
  }
  func.func @transform_1(%arg0: i32) -> (i32, i32) {
    %c0_i32 = arith.constant 0 : i32
    %c0_i32_0 = arith.constant 0 : i32
    return %c0_i32, %arg0 : i32, i32
  }
  func.func @transform_2(%arg0: i32) -> (i32, i32) {
    %c0_i32 = arith.constant 0 : i32
    %c0_i32_0 = arith.constant 0 : i32
    %c0_i32_1 = arith.constant 0 : i32
    return %c0_i32, %c0_i32_0 : i32, i32
  }
  func.func @transform_3(%arg0: i32) -> (i32, i32) {
    %c0_i32 = arith.constant 0 : i32
    %c0_i32_0 = arith.constant 0 : i32
    return %c0_i32, %arg0 : i32, i32
  }
}

</mosaic_0001>

<bundles_post_ra>
// kernel: netD_forward.6
= control target key start
LH: loop header
LB: loop body
LE: loop exit
PB: predicated region body
PF: predicated region fallthrough
CT: control target
= control target key end

     0   :  { %s1103_s12 = smov 0   ;;  %s1105_s13 = smov 0   ;;  %s1315_s0 = inlined_call_operand.vmem [shape: bf16[4,48], index: 0, kind: input, shape index: {}]   ;;  %s1316_s1 = inlined_call_operand.vmem [shape: bf16[48,13824], index: 1, kind: input, shape index: {}]   ;;  %s1317_s2 = inlined_call_operand.vmem [shape: f32[4,1], index: 2, kind: input, shape index: {}]   ;;  %s1318_s3 = inlined_call_operand.vmem [shape: bf16[4,13824], index: 3, kind: output, shape index: {}]  }
   0x1   :  { %s1107_s14 = smov 0  }
   0x2 LB: > { %s916_s15 = sadd.s32 4294967295, %s1079_s14   ;;  %s1120_s16 = sadd.s32 1, %s1079_s14   ;;  %s1079_s14 = sphi %s1107_s14, %s1321_s14   ;;  %s1075_s13 = sphi %s1105_s13, %s1320_s13   ;;  %s1071_s12 = sphi %s1103_s12, %s1319_s12  }
   0x3   : > { %s38_s17 = ssub.s32 %s1079_s14, %s1120_s16  ;;  %s41_s18 = sadd.s32 1, %s1075_s13 }
   0x4   : > { %p39_p0 = scmp.eq.s32.totalorder %s38_s17, 0  ;;  %p48_p1 = scmp.ne.s32.totalorder %s1075_s13, %s1071_s12 }
   0x5   : > { %p49_p2 = scmp.eq.s32.totalorder %s1079_s14, 0  ;;  %p919_p4 = scmp.ge.s32.totalorder %s1079_s14, 9 }
   0x6   : > { %s1129_s19 = scalar_select %p39_p0, %s1075_s13, %s41_s18  }
   0x7   : > { %p50_p3 = por %p49_p2, %p48_p1  ;;  %127 = sbr.rel (%p919_p4) target bundleno = 37 (0x25), region = 24 }
   0xe   : > { %130 = sbr.rel (!%p50_p3) target bundleno = 37 (0x25), region = 28  ;;  %s132_s20 = sand.u32 (%p50_p3), 1, %s1075_s13  }
   0xf   : > { %s973_s21 = smul.u32 (%p50_p3), 48, %s1079_s14 }
  0x10   : > { %s974_s22 = smul.u32 (%p50_p3), 288, %s132_s20 }
  0x11   : > { %s1137_s25 = scalar_lea.vmem (%p50_p3), %s1316_s1, %s973_s21 }
  0x12   : > { %v150_v0 = vld [vmem:[%s1137_s25] sm:$0xff] (%p50_p3)  ;;  %v152_v1 = vld [vmem:[%s1137_s25 + $0x8] sm:$0xff] (%p50_p3)  ;;  %v154_v2 = vld [vmem:[%s1137_s25 + $0x10] sm:$0xff] (%p50_p3)  ;;  %s1142_s26 = scalar_lea.vmem (%p50_p3), [#allocation2], %s974_s22 }
  0x13   : > { %151 = vst [vmem:[%s1142_s26] sm:$0xff] (%p50_p3), %v150_v0  ;;  %153 = vst [vmem:[%s1142_s26 + $0x8] sm:$0xff] (%p50_p3), %v152_v1  ;;  %v156_v3 = vld [vmem:[%s1137_s25 + $0x18] sm:$0xff] (%p50_p3)  ;;  %v158_v4 = vld [vmem:[%s1137_s25 + $0x20] sm:$0xff] (%p50_p3) }
  0x14   : > { %155 = vst [vmem:[%s1142_s26 + $0x10] sm:$0xff] (%p50_p3), %v154_v2  ;;  %v160_v5 = vld [vmem:[%s1137_s25 + $0x28] sm:$0xff] (%p50_p3)  ;;  %157 = vst [vmem:[%s1142_s26 + $0x18] sm:$0xff] (%p50_p3), %v156_v3  ;;  %v162_v6 = vld [vmem:[%s1137_s25 + $0x1b0] sm:$0xff] (%p50_p3) }
  0x15   : > { %159 = vst [vmem:[%s1142_s26 + $0x20] sm:$0xff] %v158_v4  ;;  %161 = vst [vmem:[%s1142_s26 + $0x28] sm:$0xff] %v160_v5  ;;  %v164_v7 = vld [vmem:[%s1137_s25 + $0x1b8] sm:$0xff]  ;;  %v166_v8 = vld [vmem:[%s1137_s25 + $0x1c0] sm:$0xff] }
  0x16   : > { %163 = vst [vmem:[%s1142_s26 + $0x30] sm:$0xff] %v162_v6  ;;  %165 = vst [vmem:[%s1142_s26 + $0x38] sm:$0xff] %v164_v7  ;;  %v168_v9 = vld [vmem:[%s1137_s25 + $0x1c8] sm:$0xff]  ;;  %v170_v10 = vld [vmem:[%s1137_s25 + $0x1d0] sm:$0xff] }
  0x17   : > { %167 = vst [vmem:[%s1142_s26 + $0x40] sm:$0xff] %v166_v8  ;;  %v172_v11 = vld [vmem:[%s1137_s25 + $0x1d8] sm:$0xff]  ;;  %169 = vst [vmem:[%s1142_s26 + $0x48] sm:$0xff] %v168_v9  ;;  %v174_v12 = vld [vmem:[%s1137_s25 + $0x360] sm:$0xff] }
  0x18   : > { %171 = vst [vmem:[%s1142_s26 + $0x50] sm:$0xff] %v170_v10  ;;  %173 = vst [vmem:[%s1142_s26 + $0x58] sm:$0xff] %v172_v11  ;;  %v176_v13 = vld [vmem:[%s1137_s25 + $0x368] sm:$0xff]  ;;  %v178_v14 = vld [vmem:[%s1137_s25 + $0x370] sm:$0xff] }
  0x19   : > { %175 = vst [vmem:[%s1142_s26 + $0x60] sm:$0xff] %v174_v12  ;;  %177 = vst [vmem:[%s1142_s26 + $0x68] sm:$0xff] %v176_v13  ;;  %v180_v15 = vld [vmem:[%s1137_s25 + $0x378] sm:$0xff]  ;;  %v182_v16 = vld [vmem:[%s1137_s25 + $0x380] sm:$0xff] }
  0x1a   : > { %179 = vst [vmem:[%s1142_s26 + $0x70] sm:$0xff] %v178_v14  ;;  %v184_v17 = vld [vmem:[%s1137_s25 + $0x388] sm:$0xff]  ;;  %181 = vst [vmem:[%s1142_s26 + $0x78] sm:$0xff] %v180_v15  ;;  %v186_v18 = vld [vmem:[%s1137_s25 + $0x510] sm:$0xff] }
  0x1b   : > { %183 = vst [vmem:[%s1142_s26 + $0x80] sm:$0xff] %v182_v16  ;;  %185 = vst [vmem:[%s1142_s26 + $0x88] sm:$0xff] %v184_v17  ;;  %v188_v19 = vld [vmem:[%s1137_s25 + $0x518] sm:$0xff]  ;;  %v190_v20 = vld [vmem:[%s1137_s25 + $0x520] sm:$0xff] }
  0x1c   : > { %187 = vst [vmem:[%s1142_s26 + $0x90] sm:$0xff] %v186_v18  ;;  %189 = vst [vmem:[%s1142_s26 + $0x98] sm:$0xff] %v188_v19  ;;  %v192_v21 = vld [vmem:[%s1137_s25 + $0x528] sm:$0xff]  ;;  %v194_v22 = vld [vmem:[%s1137_s25 + $0x530] sm:$0xff] }
  0x1d   : > { %191 = vst [vmem:[%s1142_s26 + $0xa0] sm:$0xff] %v190_v20  ;;  %v196_v23 = vld [vmem:[%s1137_s25 + $0x538] sm:$0xff]  ;;  %193 = vst [vmem:[%s1142_s26 + $0xa8] sm:$0xff] %v192_v21  ;;  %v198_v24 = vld [vmem:[%s1137_s25 + $0x6c0] sm:$0xff] }
  0x1e   : > { %195 = vst [vmem:[%s1142_s26 + $0xb0] sm:$0xff] %v194_v22  ;;  %197 = vst [vmem:[%s1142_s26 + $0xb8] sm:$0xff] %v196_v23  ;;  %v200_v25 = vld [vmem:[%s1137_s25 + $0x6c8] sm:$0xff]  ;;  %v202_v26 = vld [vmem:[%s1137_s25 + $0x6d0] sm:$0xff] }
  0x1f   : > { %199 = vst [vmem:[%s1142_s26 + $0xc0] sm:$0xff] %v198_v24  ;;  %201 = vst [vmem:[%s1142_s26 + $0xc8] sm:$0xff] %v200_v25  ;;  %v204_v27 = vld [vmem:[%s1137_s25 + $0x6d8] sm:$0xff]  ;;  %v206_v28 = vld [vmem:[%s1137_s25 + $0x6e0] sm:$0xff] }
  0x20   : > { %203 = vst [vmem:[%s1142_s26 + $0xd0] sm:$0xff] %v202_v26  ;;  %v208_v29 = vld [vmem:[%s1137_s25 + $0x6e8] sm:$0xff]  ;;  %205 = vst [vmem:[%s1142_s26 + $0xd8] sm:$0xff] %v204_v27  ;;  %v210_v30 = vld [vmem:[%s1137_s25 + $0x870] sm:$0xff] }
  0x21   : > { %207 = vst [vmem:[%s1142_s26 + $0xe0] sm:$0xff] %v206_v28  ;;  %209 = vst [vmem:[%s1142_s26 + $0xe8] sm:$0xff] %v208_v29  ;;  %v212_v31 = vld [vmem:[%s1137_s25 + $0x878] sm:$0xff]  ;;  %v214_v32 = vld [vmem:[%s1137_s25 + $0x880] sm:$0xff] }
  0x22   : > { %211 = vst [vmem:[%s1142_s26 + $0xf0] sm:$0xff] %v210_v30  ;;  %213 = vst [vmem:[%s1142_s26 + $0xf8] sm:$0xff] %v212_v31  ;;  %v216_v33 = vld [vmem:[%s1137_s25 + $0x888] sm:$0xff]  ;;  %v218_v34 = vld [vmem:[%s1137_s25 + $0x890] sm:$0xff] }
  0x23   : > { %215 = vst [vmem:[%s1142_s26 + $0x100] sm:$0xff] %v214_v32  ;;  %v220_v35 = vld [vmem:[%s1137_s25 + $0x898] sm:$0xff]  ;;  %217 = vst [vmem:[%s1142_s26 + $0x108] sm:$0xff] %v216_v33 }
  0x24   : > { %219 = vst [vmem:[%s1142_s26 + $0x110] sm:$0xff] %v218_v34  ;;  %221 = vst [vmem:[%s1142_s26 + $0x118] sm:$0xff] %v220_v35 }
  0x25 PF: > { %p921_p5 = scmp.ge.s32.totalorder %s1079_s14, 1  ;;  %p226_p6 = scmp.lt.s32.totalorder %s1079_s14, 10 }
  0x27   : > { %p227_p7 = pnand %p921_p5, %p226_p6 }
  0x28   : > { %s233_s27 = sand.u32 (!%p227_p7), 1, %s1071_s12   ;;  %v1081_v36 = vmov (!%p227_p7), 0   ;;  %v301_v37 = vld [vmem:[%s1317_s2] sm:$0xf] (!%p227_p7)  ;;  %vm487_vm0 = vcmask (!%p227_p7), 392192   ;;  %s257_s7 = smul.u32 (!%p227_p7), 12, %s916_s15  ;;  %v802_v13 = vlaneseq (!%p227_p7) }
  0x29   : > { %230 = sbr.rel (%p227_p7) target bundleno = 307 (0x133), region = 51  ;;  %523 = vmatprep.mubr.bf16.mxu0 (!%p227_p7), %v1081_v36  ;;  %564 = vmatprep.mubr.bf16.mxu1 (!%p227_p7), %v1081_v36  ;;  %v264_v51 = vld [vmem:[%s1315_s0] sm:$0x3] (!%p227_p7)  ;;  %v1082_v11 = vmov (!%p227_p7), 1983009808  }
  0x2a   : > { %s975_s28 = smul.u32 (!%p227_p7), 288, %s233_s27  ;;  %1002 = vset.pattern.permute.xlu0 (!%p227_p7), %v1081_v36  ;;  %v800_v12 = vunpack.c.l.s4 (!%p227_p7), %v1082_v11  ;;  %p258_p8 = scmp.lt.s32.totalorder (!%p227_p7), %s257_s7, 107  ;;  %v803_v21 = vshrl.u32 (!%p227_p7), %v802_v13, 7 }
  0x2b   : > { %304 = vperm.xlu0 (!%p227_p7), %1002, %v301_v37  }
  0x2c   : > { %s1222_s4 = scalar_lea.vmem (!%p227_p7), [#allocation2], %s975_s28  ;;  %v801_v20 = vunpack.c.0.s8 (!%p227_p7), %v800_v12 }
  0x2d   : > { %v1003_v38 = vld [vmem:[%s1222_s4 + $0x4] ss:$48 sps:$4 sm:$0xff] (!%p227_p7)   ;;  %v1005_v39 = vld [vmem:[%s1222_s4 + $0xc] ss:$48 sps:$4 sm:$0xff] (!%p227_p7)   ;;  %v1007_v40 = vld [vmem:[%s1222_s4] ss:$48 sps:$4 sm:$0xff] (!%p227_p7)  }
  0x2e   : > { %491 = vmatprep.subr.bf16.mxu0 (!%p227_p7), %v1003_v38  ;;  %v1008_v41 = vld [vmem:[%s1222_s4 + $0x8] ss:$48 sps:$4 sm:$0xff] (!%p227_p7)   ;;  %532 = vmatprep.subr.bf16.mxu1 (!%p227_p7), %v1005_v39  ;;  %v1009_v42 = vld [vmem:[%s1222_s4 + $0x64] ss:$48 sps:$4 sm:$0xff] (!%p227_p7)   ;;  %v1011_v43 = vld [vmem:[%s1222_s4 + $0x6c] ss:$48 sps:$4 sm:$0xff] (!%p227_p7)   ;;  %v1281_v33 = vsub.s32 (!%p227_p7), %v801_v20, %v803_v21 }
  0x2f   : > { %492 = vmatpush1.bf16.msra.mxu0 (!%p227_p7), %v1007_v40  ;;  %533 = vmatpush1.bf16.msra.mxu1 (!%p227_p7), %v1008_v41  ;;  %v1013_v44 = vld [vmem:[%s1222_s4 + $0x60] ss:$48 sps:$4 sm:$0xff] (!%p227_p7)   ;;  %v1014_v45 = vld [vmem:[%s1222_s4 + $0x68] ss:$48 sps:$4 sm:$0xff] (!%p227_p7)   ;;  %v1015_v46 = vld [vmem:[%s1222_s4 + $0xc4] ss:$48 sps:$4 sm:$0xff] (!%p227_p7)  }
  0x30   : > { %493 = vmatprep.subr.bf16.mxu0 %v1009_v42  ;;  %534 = vmatprep.subr.bf16.mxu1 %v1011_v43  ;;  %v1017_v47 = vld [vmem:[%s1222_s4 + $0xcc] ss:$48 sps:$4 sm:$0xff]   ;;  %v1019_v48 = vld [vmem:[%s1222_s4 + $0xc0] ss:$48 sps:$4 sm:$0xff]   ;;  %v1020_v49 = vld [vmem:[%s1222_s4 + $0xc8] ss:$48 sps:$4 sm:$0xff]  }
  0x31   : > { %v1023_v50 = vld [vmem:[%s1222_s4 + $0x14] ss:$48 sps:$4 sm:$0xff]   ;;  %v1026_v52 = vld [vmem:[%s1222_s4 + $0x1c] ss:$48 sps:$4 sm:$0xff]   ;;  %v1021_v53 = vld [vmem:[%s1222_s4 + $0x10] ss:$48 sps:$4 sm:$0xff]  }
  0x32   : > { %v1024_v54 = vld [vmem:[%s1222_s4 + $0x18] ss:$48 sps:$4 sm:$0xff]   ;;  %v1029_v55 = vld [vmem:[%s1222_s4 + $0x74] ss:$48 sps:$4 sm:$0xff]   ;;  %v1032_v56 = vld [vmem:[%s1222_s4 + $0x7c] ss:$48 sps:$4 sm:$0xff]  }
  0x33   : > { %494 = vmatpush1.bf16.msra.mxu0 %v1013_v44  ;;  %535 = vmatpush1.bf16.msra.mxu1 %v1014_v45  ;;  %v1027_v57 = vld [vmem:[%s1222_s4 + $0x70] ss:$48 sps:$4 sm:$0xff]   ;;  %v1030_v58 = vld [vmem:[%s1222_s4 + $0x78] ss:$48 sps:$4 sm:$0xff]   ;;  %v1035_v59 = vld [vmem:[%s1222_s4 + $0xd4] ss:$48 sps:$4 sm:$0xff]  }
  0x34   : > { %495 = vmatprep.subr.bf16.mxu0 %v1015_v46  ;;  %536 = vmatprep.subr.bf16.mxu1 %v1017_v47  ;;  %v1038_v60 = vld [vmem:[%s1222_s4 + $0xdc] ss:$48 sps:$4 sm:$0xff]   ;;  %v1033_v61 = vld [vmem:[%s1222_s4 + $0xd0] ss:$48 sps:$4 sm:$0xff]   ;;  %v1036_v62 = vld [vmem:[%s1222_s4 + $0xd8] ss:$48 sps:$4 sm:$0xff]  }
  0x35   : > { %v1041_v63 = vld [vmem:[%s1222_s4 + $0x24] ss:$48 sps:$4 sm:$0xff]   ;;  %v1044_v0 = vld [vmem:[%s1222_s4 + $0x2c] ss:$48 sps:$4 sm:$0xff]   ;;  %v1039_v1 = vld [vmem:[%s1222_s4 + $0x20] ss:$48 sps:$4 sm:$0xff]  }
  0x36   : > { %v1042_v2 = vld [vmem:[%s1222_s4 + $0x28] ss:$48 sps:$4 sm:$0xff]   ;;  %v1047_v3 = vld [vmem:[%s1222_s4 + $0x84] ss:$48 sps:$4 sm:$0xff]   ;;  %v1050_v4 = vld [vmem:[%s1222_s4 + $0x8c] ss:$48 sps:$4 sm:$0xff]  }
  0x37   : > { %496 = vmatpush1.bf16.msra.mxu0 %v1019_v48  ;;  %537 = vmatpush1.bf16.msra.mxu1 %v1020_v49  ;;  %v1045_v5 = vld [vmem:[%s1222_s4 + $0x80] ss:$48 sps:$4 sm:$0xff]   ;;  %v1048_v6 = vld [vmem:[%s1222_s4 + $0x88] ss:$48 sps:$4 sm:$0xff]   ;;  %v1053_v7 = vld [vmem:[%s1222_s4 + $0xe4] ss:$48 sps:$4 sm:$0xff]  }
  0x38   : > { %573 = vmatprep.subr.bf16.mxu0 %v1023_v50  ;;  %614 = vmatprep.subr.bf16.mxu1 %v1026_v52  ;;  %v1056_v8 = vld [vmem:[%s1222_s4 + $0xec] ss:$48 sps:$4 sm:$0xff]   ;;  %v1051_v9 = vld [vmem:[%s1222_s4 + $0xe0] ss:$48 sps:$4 sm:$0xff]   ;;  %v1054_v10 = vld [vmem:[%s1222_s4 + $0xe8] ss:$48 sps:$4 sm:$0xff]  }
  0x39   : > { %s1323_s7 = smov (!%p258_p8, %s257_s7), 107 }
  0x3a   : > { %959 = vmatmul.mubr.msk.bf16.vlgmr.msra.gmra.mrb[0].mxu0 %vm487_vm0, %v264_v51  ;;  %960 = vmatmul.mubr.msk.bf16.vlgmr.msra.gmra.mrb[0].mxu1 %vm487_vm0, %v264_v51  ;;  %s922_s8 = sshll.u32 %s1323_s7, 1 }
  0x3b   : > { %574 = vmatpush1.bf16.msra.mxu0 %v1021_v53  ;;  %615 = vmatpush1.bf16.msra.mxu1 %v1024_v54  ;;  %s1288_s11 = scalar_lea.vmem %s1318_s3, %s922_s8 }
  0x3c   : > { %575 = vmatprep.subr.bf16.mxu0 %v1029_v55  ;;  %616 = vmatprep.subr.bf16.mxu1 %v1032_v56 }
  0x3d   : > { %605 = vmatprep.mubr.bf16.mxu0 %v1081_v36  ;;  %646 = vmatprep.mubr.bf16.mxu1 %v1081_v36 }
  0x3f   : > { %576 = vmatpush1.bf16.msra.mxu0 %v1027_v57  ;;  %617 = vmatpush1.bf16.msra.mxu1 %v1030_v58 }
  0x40   : > { %577 = vmatprep.subr.bf16.mxu0 %v1035_v59  ;;  %618 = vmatprep.subr.bf16.mxu1 %v1038_v60 }
  0x43   : > { %578 = vmatpush1.bf16.msra.mxu0 %v1033_v61  ;;  %619 = vmatpush1.bf16.msra.mxu1 %v1036_v62 }
  0x44   : > { %655 = vmatprep.subr.bf16.mxu0 %v1041_v63  ;;  %696 = vmatprep.subr.bf16.mxu1 %v1044_v0 }
  0x46   : > { %961 = vmatmul.mubr.msk.bf16.vlgmr.msra.gmra.mrb[4].mxu0 %vm487_vm0, %v264_v51  ;;  %962 = vmatmul.mubr.msk.bf16.vlgmr.msra.gmra.mrb[4].mxu1 %vm487_vm0, %v264_v51 }
  0x47   : > { %656 = vmatpush1.bf16.msra.mxu0 %v1039_v1  ;;  %697 = vmatpush1.bf16.msra.mxu1 %v1042_v2 }
  0x48   : > { %657 = vmatprep.subr.bf16.mxu0 %v1047_v3  ;;  %698 = vmatprep.subr.bf16.mxu1 %v1050_v4 }
  0x49   : > { %687 = vmatprep.mubr.bf16.mxu0 %v1081_v36  ;;  %728 = vmatprep.mubr.bf16.mxu1 %v1081_v36 }
  0x4b   : > { %658 = vmatpush1.bf16.msra.mxu0 %v1045_v5  ;;  %699 = vmatpush1.bf16.msra.mxu1 %v1048_v6 }
  0x4c   : > { %659 = vmatprep.subr.bf16.mxu0 %v1053_v7  ;;  %700 = vmatprep.subr.bf16.mxu1 %v1056_v8 }
  0x4f   : > { %660 = vmatpush1.bf16.msra.mxu0 %v1051_v9  ;;  %701 = vmatpush1.bf16.msra.mxu1 %v1054_v10 }
  0x52   : > { %963 = vmatmul.mubr.msk.bf16.vlgmr.msra.gmra.mrb[8].mxu0 %vm487_vm0, %v264_v51  ;;  %964 = vmatmul.mubr.msk.bf16.vlgmr.msra.gmra.mrb[8].mxu1 %vm487_vm0, %v264_v51 }
  0xaa   : > { %v1275_v14 = vpop.permute.xlu0 %304 }
 0x10d   : > { %v525_v15 = vpop.f32.mrb[0].mxu0  ;;  %v566_v16 = vpop.f32.mrb[0].mxu1 }
 0x10e   : > { %v526_v17 = vadd.f32 %v525_v15, %v1275_v14  ;;  %v567_v18 = vadd.f32 %v566_v16, %v1275_v14  ;;  %v527_v19 = vpop.f32.mrb[1].mxu0  ;;  %v568_v22 = vpop.f32.mrb[1].mxu1 }
 0x10f   : > { %v528_v23 = vadd.f32 %v527_v19, %v1275_v14  ;;  %v569_v24 = vadd.f32 %v568_v22, %v1275_v14  ;;  %v529_v25 = vpop.f32.mrb[2].mxu0  ;;  %v570_v26 = vpop.f32.mrb[2].mxu1 }
 0x110   : > { %vm737_vm1 = vcmp.ge.f32.partialorder %v526_v17, 0.0  ;;  %v749_v27 = vmul.f32 0.01, %v526_v17  ;;  %vm739_vm2 = vcmp.ge.f32.partialorder %v567_v18, 0.0  ;;  %v751_v28 = vmul.f32 0.01, %v567_v18 }
 0x111   : > { %vm738_vm3 = vcmp.ge.f32.partialorder %v528_v23, 0.0  ;;  %v750_v29 = vmul.f32 0.01, %v528_v23  ;;  %vm740_vm4 = vcmp.ge.f32.partialorder %v569_v24, 0.0  ;;  %v752_v30 = vmul.f32 0.01, %v569_v24 }
 0x112   : > { %v761_v31 = vsel %vm737_vm1, %v526_v17, %v749_v27  ;;  %v763_v32 = vsel %vm739_vm2, %v567_v18, %v751_v28  ;;  %v530_v34 = vpop.f32.mrb[3].mxu0  ;;  %v571_v35 = vpop.f32.mrb[3].mxu1 }
 0x113   : > { %v762_v36 = vsel %vm738_vm3, %v528_v23, %v750_v29  ;;  %v764_v37 = vsel %vm740_vm4, %v569_v24, %v752_v30 }
 0x114   : > { %v965_v38 = vpack.c.bf16 %v762_v36, %v761_v31  ;;  %v966_v39 = vpack.c.bf16 %v764_v37, %v763_v32 }
 0x116   : > { %v805_v40 = vrot.slane %v965_v38, %v1281_v33  ;;  %v812_v41 = vrot.slane %v966_v39, %v1281_v33 }
 0x118   : > { %v813_v42 = vcombine.low %v805_v40, %v812_v41 }
 0x119   : > { %v607_v43 = vpop.f32.mrb[4].mxu0  ;;  %v648_v44 = vpop.f32.mrb[4].mxu1 }
 0x11a   : > { %851 = vst [vmem:[%s1288_s11] sm:$0xff] %v813_v42  ;;  %v608_v45 = vadd.f32 %v607_v43, %v1275_v14  ;;  %v649_v46 = vadd.f32 %v648_v44, %v1275_v14  ;;  %v609_v47 = vpop.f32.mrb[5].mxu0  ;;  %v650_v48 = vpop.f32.mrb[5].mxu1 }
 0x11b   : > { %v610_v49 = vadd.f32 %v609_v47, %v1275_v14  ;;  %v651_v50 = vadd.f32 %v650_v48, %v1275_v14  ;;  %v611_v51 = vpop.f32.mrb[6].mxu0  ;;  %v652_v52 = vpop.f32.mrb[6].mxu1 }
 0x11c   : > { %vm741_vm5 = vcmp.ge.f32.partialorder %v608_v45, 0.0  ;;  %v753_v53 = vmul.f32 0.01, %v608_v45  ;;  %vm743_vm6 = vcmp.ge.f32.partialorder %v649_v46, 0.0  ;;  %v755_v54 = vmul.f32 0.01, %v649_v46 }
 0x11d   : > { %vm742_vm7 = vcmp.ge.f32.partialorder %v610_v49, 0.0  ;;  %v754_v55 = vmul.f32 0.01, %v610_v49  ;;  %vm744_vm8 = vcmp.ge.f32.partialorder %v651_v50, 0.0  ;;  %v756_v56 = vmul.f32 0.01, %v651_v50 }
 0x11e   : > { %v765_v57 = vsel %vm741_vm5, %v608_v45, %v753_v53  ;;  %v767_v58 = vsel %vm743_vm6, %v649_v46, %v755_v54  ;;  %v612_v59 = vpop.f32.mrb[7].mxu0  ;;  %v653_v60 = vpop.f32.mrb[7].mxu1 }
 0x11f   : > { %v766_v61 = vsel %vm742_vm7, %v610_v49, %v754_v55  ;;  %v768_v62 = vsel %vm744_vm8, %v651_v50, %v756_v56 }
 0x120   : > { %v967_v63 = vpack.c.bf16 %v766_v61, %v765_v57  ;;  %v968_v0 = vpack.c.bf16 %v768_v62, %v767_v58 }
 0x122   : > { %v822_v1 = vrot.slane %v967_v63, %v1281_v33  ;;  %v829_v2 = vrot.slane %v968_v0, %v1281_v33 }
 0x124   : > { %v830_v3 = vcombine.low %v822_v1, %v829_v2 }
 0x125   : > { %v689_v4 = vpop.f32.mrb[8].mxu0  ;;  %v730_v5 = vpop.f32.mrb[8].mxu1 }
 0x126   : > { %852 = vst [vmem:[%s1288_s11 + $0x8] sm:$0xff] %v830_v3  ;;  %v690_v6 = vadd.f32 %v689_v4, %v1275_v14  ;;  %v731_v7 = vadd.f32 %v730_v5, %v1275_v14  ;;  %v691_v8 = vpop.f32.mrb[9].mxu0  ;;  %v732_v9 = vpop.f32.mrb[9].mxu1 }
 0x127   : > { %v692_v10 = vadd.f32 %v691_v8, %v1275_v14  ;;  %v733_v11 = vadd.f32 %v732_v9, %v1275_v14  ;;  %v693_v12 = vpop.f32.mrb[10].mxu0  ;;  %v734_v13 = vpop.f32.mrb[10].mxu1 }
 0x128   : > { %vm745_vm9 = vcmp.ge.f32.partialorder %v690_v6, 0.0  ;;  %v757_v15 = vmul.f32 0.01, %v690_v6  ;;  %vm747_vm10 = vcmp.ge.f32.partialorder %v731_v7, 0.0  ;;  %v759_v16 = vmul.f32 0.01, %v731_v7 }
 0x129   : > { %vm746_vm11 = vcmp.ge.f32.partialorder %v692_v10, 0.0  ;;  %v758_v17 = vmul.f32 0.01, %v692_v10  ;;  %vm748_vm12 = vcmp.ge.f32.partialorder %v733_v11, 0.0  ;;  %v760_v18 = vmul.f32 0.01, %v733_v11 }
 0x12a   : > { %v769_v19 = vsel %vm745_vm9, %v690_v6, %v757_v15  ;;  %v771_v20 = vsel %vm747_vm10, %v731_v7, %v759_v16  ;;  %v694_v21 = vpop.f32.mrb[11].mxu0  ;;  %v735_v22 = vpop.f32.mrb[11].mxu1 }
 0x12b   : > { %v770_v23 = vsel %vm746_vm11, %v692_v10, %v758_v17  ;;  %v772_v24 = vsel %vm748_vm12, %v733_v11, %v760_v18 }
 0x12c   : > { %v969_v25 = vpack.c.bf16 %v770_v23, %v769_v19  ;;  %v970_v26 = vpack.c.bf16 %v772_v24, %v771_v20 }
 0x12e   : > { %v839_v14 = vrot.slane %v969_v25, %v1281_v33  ;;  %v846_v27 = vrot.slane %v970_v26, %v1281_v33 }
 0x130   : > { %v847_v28 = vcombine.low %v839_v14, %v846_v27 }
 0x132   : > { %853 = vst [vmem:[%s1288_s11 + $0x10] sm:$0xff] %v847_v28 }
 0x133 PF: > { %p10_p9 = scmp.ge.s32.totalorder %s1120_s16, 11   ;;  %s1319_s12 = smov %s1075_s13 }
 0x134   : > { %s1320_s13 = smov %s1129_s19  ;;  %s1321_s14 = smov %s1120_s16 }
 0x135   :  { %12 = sbr.rel (!%p10_p9) target bundleno = 2 (0x2), region = 90 }

// kernel: netD_forward.7
= control target key start
LH: loop header
LB: loop body
LE: loop exit
PB: predicated region body
PF: predicated region fallthrough
CT: control target
= control target key end

     0   :  { %s1078_s12 = smov 0   ;;  %s1080_s13 = smov 0   ;;  %s1275_s0 = inlined_call_operand.vmem [shape: bf16[8,64], index: 0, kind: input, shape index: {}]   ;;  %s1276_s1 = inlined_call_operand.vmem [shape: bf16[64,3456], index: 1, kind: input, shape index: {}]   ;;  %s1277_s2 = inlined_call_operand.vmem [shape: f32[8,1], index: 2, kind: input, shape index: {}]   ;;  %s1278_s3 = inlined_call_operand.vmem [shape: bf16[8,3456], index: 3, kind: output, shape index: {}]  }
   0x1   :  { %s1082_s14 = smov 0  }
   0x2 LB: > { %s855_s15 = sadd.s32 4294967295, %s1053_s14   ;;  %s1095_s16 = sadd.s32 1, %s1053_s14   ;;  %s1053_s14 = sphi %s1082_s14, %s1281_s14   ;;  %s1049_s13 = sphi %s1080_s13, %s1280_s13   ;;  %s1045_s12 = sphi %s1078_s12, %s1279_s12  }
   0x3   : > { %s38_s17 = ssub.s32 %s1053_s14, %s1095_s16  ;;  %s41_s18 = sadd.s32 1, %s1049_s13 }
   0x4   : > { %p39_p0 = scmp.eq.s32.totalorder %s38_s17, 0  ;;  %p48_p1 = scmp.ne.s32.totalorder %s1049_s13, %s1045_s12 }
   0x5   : > { %p49_p2 = scmp.eq.s32.totalorder %s1053_s14, 0  ;;  %p858_p4 = scmp.ge.s32.totalorder %s1053_s14, 3 }
   0x6   : > { %s1104_s19 = scalar_select %p39_p0, %s1049_s13, %s41_s18  }
   0x7   : > { %p50_p3 = por %p49_p2, %p48_p1  ;;  %127 = sbr.rel (%p858_p4) target bundleno = 40 (0x28), region = 24 }
   0xe   : > { %130 = sbr.rel (!%p50_p3) target bundleno = 40 (0x28), region = 28  ;;  %s132_s20 = sand.u32 (%p50_p3), 1, %s1049_s13  }
   0xf   : > { %s926_s21 = smul.u32 (%p50_p3), 36, %s1053_s14 }
  0x10   : > { %s949_s22 = smul.u32 (%p50_p3), 288, %s132_s20 }
  0x11   : > { %s1112_s25 = scalar_lea.vmem (%p50_p3), %s1276_s1, %s926_s21 }
  0x12   : > { %v152_v0 = vld [vmem:[%s1112_s25] sm:$0xff] (%p50_p3)  ;;  %v154_v1 = vld [vmem:[%s1112_s25 + $0x8] sm:$0xff] (%p50_p3)  ;;  %v156_v2 = vld [vmem:[%s1112_s25 + $0x10] sm:$0xff] (%p50_p3)  ;;  %s1117_s26 = scalar_lea.vmem (%p50_p3), [#allocation2], %s949_s22 }
  0x13   : > { %153 = vst [vmem:[%s1117_s26] sm:$0xff] (%p50_p3), %v152_v0  ;;  %155 = vst [vmem:[%s1117_s26 + $0x8] sm:$0xff] (%p50_p3), %v154_v1  ;;  %v158_v3 = vld [vmem:[%s1112_s25 + $0x18] sm:$0xff] (%p50_p3)  ;;  %v160_v4 = vld [vmem:[%s1112_s25 + $0x6c] sm:$0xff] (%p50_p3) }
  0x14   : > { %157 = vst [vmem:[%s1117_s26 + $0x10] sm:$0xff] (%p50_p3), %v156_v2  ;;  %v162_v5 = vld [vmem:[%s1112_s25 + $0x74] sm:$0xff] (%p50_p3)  ;;  %159 = vst [vmem:[%s1117_s26 + $0x18] sm:$0xff] (%p50_p3), %v158_v3  ;;  %v164_v6 = vld [vmem:[%s1112_s25 + $0x7c] sm:$0xff] (%p50_p3) }
  0x15   : > { %161 = vst [vmem:[%s1117_s26 + $0x24] sm:$0xff] %v160_v4  ;;  %163 = vst [vmem:[%s1117_s26 + $0x2c] sm:$0xff] %v162_v5  ;;  %v166_v7 = vld [vmem:[%s1112_s25 + $0x84] sm:$0xff]  ;;  %v168_v8 = vld [vmem:[%s1112_s25 + $0xd8] sm:$0xff] }
  0x16   : > { %165 = vst [vmem:[%s1117_s26 + $0x34] sm:$0xff] %v164_v6  ;;  %167 = vst [vmem:[%s1117_s26 + $0x3c] sm:$0xff] %v166_v7  ;;  %v170_v9 = vld [vmem:[%s1112_s25 + $0xe0] sm:$0xff]  ;;  %v172_v10 = vld [vmem:[%s1112_s25 + $0xe8] sm:$0xff] }
  0x17   : > { %169 = vst [vmem:[%s1117_s26 + $0x48] sm:$0xff] %v168_v8  ;;  %v174_v11 = vld [vmem:[%s1112_s25 + $0xf0] sm:$0xff]  ;;  %171 = vst [vmem:[%s1117_s26 + $0x50] sm:$0xff] %v170_v9  ;;  %v176_v12 = vld [vmem:[%s1112_s25 + $0x144] sm:$0xff] }
  0x18   : > { %173 = vst [vmem:[%s1117_s26 + $0x58] sm:$0xff] %v172_v10  ;;  %175 = vst [vmem:[%s1117_s26 + $0x60] sm:$0xff] %v174_v11  ;;  %v178_v13 = vld [vmem:[%s1112_s25 + $0x14c] sm:$0xff]  ;;  %v180_v14 = vld [vmem:[%s1112_s25 + $0x154] sm:$0xff] }
  0x19   : > { %177 = vst [vmem:[%s1117_s26 + $0x6c] sm:$0xff] %v176_v12  ;;  %179 = vst [vmem:[%s1117_s26 + $0x74] sm:$0xff] %v178_v13  ;;  %v182_v15 = vld [vmem:[%s1112_s25 + $0x15c] sm:$0xff]  ;;  %v184_v16 = vld [vmem:[%s1112_s25 + $0x1b0] sm:$0xff] }
  0x1a   : > { %181 = vst [vmem:[%s1117_s26 + $0x7c] sm:$0xff] %v180_v14  ;;  %v186_v17 = vld [vmem:[%s1112_s25 + $0x1b8] sm:$0xff]  ;;  %183 = vst [vmem:[%s1117_s26 + $0x84] sm:$0xff] %v182_v15  ;;  %v188_v18 = vld [vmem:[%s1112_s25 + $0x1c0] sm:$0xff] }
  0x1b   : > { %185 = vst [vmem:[%s1117_s26 + $0x90] sm:$0xff] %v184_v16  ;;  %187 = vst [vmem:[%s1117_s26 + $0x98] sm:$0xff] %v186_v17  ;;  %v190_v19 = vld [vmem:[%s1112_s25 + $0x1c8] sm:$0xff]  ;;  %v192_v20 = vld [vmem:[%s1112_s25 + $0x21c] sm:$0xff] }
  0x1c   : > { %189 = vst [vmem:[%s1117_s26 + $0xa0] sm:$0xff] %v188_v18  ;;  %191 = vst [vmem:[%s1117_s26 + $0xa8] sm:$0xff] %v190_v19  ;;  %v194_v21 = vld [vmem:[%s1112_s25 + $0x224] sm:$0xff]  ;;  %v196_v22 = vld [vmem:[%s1112_s25 + $0x22c] sm:$0xff] }
  0x1d   : > { %193 = vst [vmem:[%s1117_s26 + $0xb4] sm:$0xff] %v192_v20  ;;  %v198_v23 = vld [vmem:[%s1112_s25 + $0x234] sm:$0xff]  ;;  %195 = vst [vmem:[%s1117_s26 + $0xbc] sm:$0xff] %v194_v21  ;;  %v200_v24 = vld [vmem:[%s1112_s25 + $0x288] sm:$0xff] }
  0x1e   : > { %197 = vst [vmem:[%s1117_s26 + $0xc4] sm:$0xff] %v196_v22  ;;  %199 = vst [vmem:[%s1117_s26 + $0xcc] sm:$0xff] %v198_v23  ;;  %v202_v25 = vld [vmem:[%s1112_s25 + $0x290] sm:$0xff]  ;;  %v204_v26 = vld [vmem:[%s1112_s25 + $0x298] sm:$0xff] }
  0x1f   : > { %201 = vst [vmem:[%s1117_s26 + $0xd8] sm:$0xff] %v200_v24  ;;  %203 = vst [vmem:[%s1117_s26 + $0xe0] sm:$0xff] %v202_v25  ;;  %v206_v27 = vld [vmem:[%s1112_s25 + $0x2a0] sm:$0xff]  ;;  %v208_v28 = vld [vmem:[%s1112_s25 + $0x2f4] sm:$0xff] }
  0x20   : > { %205 = vst [vmem:[%s1117_s26 + $0xe8] sm:$0xff] %v204_v26  ;;  %v210_v29 = vld [vmem:[%s1112_s25 + $0x2fc] sm:$0xff]  ;;  %207 = vst [vmem:[%s1117_s26 + $0xf0] sm:$0xff] %v206_v27  ;;  %v212_v30 = vld [vmem:[%s1112_s25 + $0x304] sm:$0xff] }
  0x21   : > { %209 = vst [vmem:[%s1117_s26 + $0xfc] sm:$0xff] %v208_v28  ;;  %211 = vst [vmem:[%s1117_s26 + $0x104] sm:$0xff] %v210_v29  ;;  %v214_v31 = vld [vmem:[%s1112_s25 + $0x30c] sm:$0xff]  ;;  %v860_v32 = vld [vmem:[%s1112_s25 + $0x20] sm:$0xf] }
  0x22   : > { %213 = vst [vmem:[%s1117_s26 + $0x10c] sm:$0xff] %v212_v30  ;;  %215 = vst [vmem:[%s1117_s26 + $0x114] sm:$0xff] %v214_v31  ;;  %v862_v33 = vld [vmem:[%s1112_s25 + $0x8c] sm:$0xf]  ;;  %v864_v34 = vld [vmem:[%s1112_s25 + $0xf8] sm:$0xf] }
  0x23   : > { %861 = vst [vmem:[%s1117_s26 + $0x20] sm:$0xf] %v860_v32  ;;  %v866_v35 = vld [vmem:[%s1112_s25 + $0x164] sm:$0xf]  ;;  %863 = vst [vmem:[%s1117_s26 + $0x44] sm:$0xf] %v862_v33 }
  0x24   : > { %865 = vst [vmem:[%s1117_s26 + $0x68] sm:$0xf] %v864_v34  ;;  %867 = vst [vmem:[%s1117_s26 + $0x8c] sm:$0xf] %v866_v35  ;;  %v868_v36 = vld [vmem:[%s1112_s25 + $0x1d0] sm:$0xf] }
  0x25   : > { %v870_v37 = vld [vmem:[%s1112_s25 + $0x23c] sm:$0xf]  ;;  %v872_v38 = vld [vmem:[%s1112_s25 + $0x2a8] sm:$0xf]  ;;  %869 = vst [vmem:[%s1117_s26 + $0xb0] sm:$0xf] %v868_v36 }
  0x26   : > { %871 = vst [vmem:[%s1117_s26 + $0xd4] sm:$0xf] %v870_v37  ;;  %873 = vst [vmem:[%s1117_s26 + $0xf8] sm:$0xf] %v872_v38  ;;  %v874_v39 = vld [vmem:[%s1112_s25 + $0x314] sm:$0xf] }
  0x27   : > { %875 = vst [vmem:[%s1117_s26 + $0x11c] sm:$0xf] %v874_v39 }
  0x28 PF: > { %p876_p5 = scmp.ge.s32.totalorder %s1053_s14, 1  ;;  %p243_p6 = scmp.lt.s32.totalorder %s1053_s14, 4 }
  0x2a   : > { %p244_p7 = pnand %p876_p5, %p243_p6 }
  0x2b   : > { %s250_s27 = sand.u32 (!%p244_p7), 1, %s1045_s12   ;;  %v1055_v40 = vmov (!%p244_p7), 0   ;;  %v322_v41 = vld [vmem:[%s1277_s2] sm:$0xff] (!%p244_p7)  ;;  %vm512_vm0 = vcmask (!%p244_p7), 523264   ;;  %v1056_v11 = vmov (!%p244_p7), 0.0   ;;  %vm1057_vm1 = vmmov (!%p244_p7), 0  }
  0x2c   : > { %247 = sbr.rel (%p244_p7) target bundleno = 317 (0x13d), region = 54  ;;  %548 = vmatprep.mubr.bf16.mxu0 (!%p244_p7), %v1055_v40  ;;  %589 = vmatprep.mubr.bf16.mxu1 (!%p244_p7), %v1055_v40  ;;  %v281_v58 = vld [vmem:[%s1275_s0] sm:$0xf] (!%p244_p7) }
  0x2d   : > { %s950_s28 = smul.u32 (!%p244_p7), 288, %s250_s27  ;;  %978 = vset.pattern.permute.xlu0 (!%p244_p7), %v1055_v40 }
  0x2e   : > { %325 = vperm.xlu0 (!%p244_p7), %978, %v322_v41   ;;  %s274_s7 = smul.u32 (!%p244_p7), 9, %s855_s15 }
  0x2f   : > { %s1205_s4 = scalar_lea.vmem (!%p244_p7), [#allocation2], %s950_s28 }
  0x30   : > { %v979_v42 = vld [vmem:[%s1205_s4 + $0x4] ss:$36 sps:$4 sm:$0xff] (!%p244_p7)   ;;  %v982_v44 = vld [vmem:[%s1205_s4 + $0x4c] ss:$36 sps:$4 sm:$0xff] (!%p244_p7)   ;;  %v985_v46 = vld [vmem:[%s1205_s4 + $0x94] ss:$36 sps:$4 sm:$0xff] (!%p244_p7)  }
  0x31   : > { %v981_v43 = vld [vmem:[%s1205_s4] ss:$36 sps:$4 sm:$0xff] (!%p244_p7)   ;;  %516 = vmatprep.subr.bf16.mxu0 (!%p244_p7), %v979_v42  ;;  %v984_v45 = vld [vmem:[%s1205_s4 + $0x48] ss:$36 sps:$4 sm:$0xff] (!%p244_p7)   ;;  %v987_v48 = vld [vmem:[%s1205_s4 + $0x90] ss:$36 sps:$4 sm:$0xff] (!%p244_p7)  }
  0x32   : > { %517 = vmatpush1.bf16.msra.mxu0 (!%p244_p7), %v981_v43  ;;  %v990_v47 = vld [vmem:[%s1205_s4 + $0xc] ss:$36 sps:$4 sm:$0xff] (!%p244_p7)   ;;  %v994_v50 = vld [vmem:[%s1205_s4 + $0x54] ss:$36 sps:$4 sm:$0xff] (!%p244_p7)   ;;  %v988_v51 = vld [vmem:[%s1205_s4 + $0xdc] ss:$36 sps:$4 sm:$0xff] (!%p244_p7)  }
  0x33   : > { %518 = vmatprep.subr.bf16.mxu0 %v982_v44  ;;  %v993_v49 = vld [vmem:[%s1205_s4 + $0x8] ss:$36 sps:$4 sm:$0xff]   ;;  %557 = vmatprep.subr.bf16.mxu1 %v990_v47  ;;  %v999_v52 = vld [vmem:[%s1205_s4 + $0x50] ss:$36 sps:$4 sm:$0xff]   ;;  %v1000_v53 = vld [vmem:[%s1205_s4 + $0x9c] ss:$36 sps:$4 sm:$0xff]  }
  0x34   : > { %558 = vmatpush1.bf16.msra.mxu1 %v993_v49  ;;  %v992_v54 = vld [vmem:[%s1205_s4 + $0xd8] ss:$36 sps:$4 sm:$0xff]   ;;  %v1006_v57 = vld [vmem:[%s1205_s4 + $0xe4] ss:$36 sps:$4 sm:$0xff]   ;;  %v996_v59 = vld [vmem:[%s1205_s4 + $0x10] ss:$36 sps:$4 sm:$0xff]  }
  0x35   : > { %559 = vmatprep.subr.bf16.mxu1 %v994_v50  ;;  %v998_v55 = vld [vmem:[%s1205_s4 + $0x14] ss:$36 sps:$4 sm:$0xff]   ;;  %v1004_v60 = vld [vmem:[%s1205_s4 + $0x5c] ss:$36 sps:$4 sm:$0xff]   ;;  %v1010_v0 = vld [vmem:[%s1205_s4 + $0xa4] ss:$36 sps:$4 sm:$0xff]  }
  0x36   : > { %519 = vmatpush1.bf16.msra.mxu0 %v984_v45  ;;  %v1005_v56 = vld [vmem:[%s1205_s4 + $0x98] ss:$36 sps:$4 sm:$0xff]   ;;  %v1011_v61 = vld [vmem:[%s1205_s4 + $0xe0] ss:$36 sps:$4 sm:$0xff]   ;;  %v1014_v4 = vld [vmem:[%s1205_s4 + $0xec] ss:$36 sps:$4 sm:$0xff]  }
  0x37   : > { %520 = vmatprep.subr.bf16.mxu0 %v985_v46  ;;  %v1017_v62 = vld [vmem:[%s1205_s4 + $0x1c] ss:$36 sps:$4 sm:$0xff]   ;;  %v1020_v2 = vld [vmem:[%s1205_s4 + $0x64] ss:$36 sps:$4 sm:$0xff]   ;;  %v1024_v6 = vld [vmem:[%s1205_s4 + $0xac] ss:$36 sps:$4 sm:$0xff]  }
  0x38   : > { %560 = vmatpush1.bf16.msra.mxu1 %v999_v52  ;;  %v1002_v63 = vld [vmem:[%s1205_s4 + $0x58] ss:$36 sps:$4 sm:$0xff]   ;;  %v1008_v3 = vld [vmem:[%s1205_s4 + $0xa0] ss:$36 sps:$4 sm:$0xff]   ;;  %v1012_v7 = vld [vmem:[%s1205_s4 + $0xe8] ss:$36 sps:$4 sm:$0xff]  }
  0x39   : > { %561 = vmatprep.subr.bf16.mxu1 %v1000_v53  ;;  %v1015_v1 = vld [vmem:[%s1205_s4 + $0x18] ss:$36 sps:$4 sm:$0xff]   ;;  %v1018_v5 = vld [vmem:[%s1205_s4 + $0x60] ss:$36 sps:$4 sm:$0xff]   ;;  %v1022_v8 = vld [vmem:[%s1205_s4 + $0xa8] ss:$36 sps:$4 sm:$0xff]  }
  0x3a   : > { %521 = vmatpush1.bf16.msra.mxu0 %v987_v48  ;;  %v1028_v9 = vld [vmem:[%s1205_s4 + $0xf4] ss:$36 sps:$4 sm:$0xff]   ;;  %v1021_v10 = vld [vmem:[%s1205_s4 + $0x20] ss:$36 sps:$4 sm:$0xff]   ;;  %v1025_v13 = vld [vmem:[%s1205_s4 + $0x68] ss:$36 sps:$4 sm:$0xff]  }
  0x3b   : > { %522 = vmatprep.subr.bf16.mxu0 %v988_v51  ;;  %v1026_v12 = vld [vmem:[%s1205_s4 + $0xf0] ss:$36 sps:$4 sm:$0xff]   ;;  %v1030_v15 = vld [vmem:[%s1205_s4 + $0xf8] ss:$36 sps:$4 sm:$0xff]   ;;  %p275_p8 = scmp.lt.s32.totalorder %s274_s7, 26 }
  0x3c   : > { %562 = vmatpush1.bf16.msra.mxu1 %v1005_v56  ;;  %v1029_v14 = vld [vmem:[%s1205_s4 + $0xb0] ss:$36 sps:$4 sm:$0xff]  }
  0x3d   : > { %563 = vmatprep.subr.bf16.mxu1 %v1006_v57  ;;  %s1283_s7 = smov (!%p275_p8, %s274_s7), 26 }
  0x3e   : > { %523 = vmatpush1.bf16.msra.mxu0 %v992_v54  ;;  %s877_s8 = sshll.u32 %s1283_s7, 2 }
  0x3f   : > { %598 = vmatprep.subr.bf16.mxu0 %v998_v55  ;;  %s1258_s11 = scalar_lea.vmem %s1278_s3, %s877_s8 }
  0x40   : > { %564 = vmatpush1.bf16.msra.mxu1 %v1011_v61 }
  0x41   : > { %914 = vmatmul.mubr.msk.bf16.vlgmr.msra.gmra.mrb[0].mxu0 %vm512_vm0, %v281_v58  ;;  %639 = vmatprep.subr.bf16.mxu1 %v1017_v62 }
  0x42   : > { %599 = vmatpush1.bf16.msra.mxu0 %v996_v59  ;;  %630 = vmatprep.mubr.bf16.mxu0 %v1055_v40 }
  0x43   : > { %600 = vmatprep.subr.bf16.mxu0 %v1004_v60  ;;  %915 = vmatmul.mubr.msk.bf16.vlgmr.msra.gmra.mrb[0].mxu1 %vm512_vm0, %v281_v58 }
  0x44   : > { %640 = vmatpush1.bf16.msra.mxu1 %v1015_v1  ;;  %671 = vmatprep.mubr.bf16.mxu1 %v1055_v40 }
  0x45   : > { %641 = vmatprep.subr.bf16.mxu1 %v1020_v2 }
  0x46   : > { %601 = vmatpush1.bf16.msra.mxu0 %v1002_v63 }
  0x47   : > { %602 = vmatprep.subr.bf16.mxu0 %v1010_v0 }
  0x48   : > { %642 = vmatpush1.bf16.msra.mxu1 %v1018_v5 }
  0x49   : > { %643 = vmatprep.subr.bf16.mxu1 %v1024_v6 }
  0x4a   : > { %603 = vmatpush1.bf16.msra.mxu0 %v1008_v3 }
  0x4b   : > { %604 = vmatprep.subr.bf16.mxu0 %v1014_v4 }
  0x4c   : > { %644 = vmatpush1.bf16.msra.mxu1 %v1022_v8 }
  0x4d   : > { %645 = vmatprep.subr.bf16.mxu1 %v1028_v9 }
  0x4e   : > { %605 = vmatpush1.bf16.msra.mxu0 %v1012_v7 }
  0x4f   : > { %937 = vmatprep.subr.bf16.mxu0 %v1056_v11 }
  0x50   : > { %646 = vmatpush1.bf16.msra.mxu1 %v1026_v12 }
  0x51   : > { %916 = vmatmul.mubr.msk.bf16.vlgmr.msra.gmra.mrb[4].mxu0 %vm512_vm0, %v281_v58 }
  0x52   : > { %938 = vmatpush3.bf16.msra.mxu0 %v1021_v10  ;;  %945 = vmatprep.mubr.msk.bf16.mxu0 %vm1057_vm1, %v1056_v11 }
  0x53   : > { %939 = vmatprep.subr.bf16.mxu0 %v1056_v11  ;;  %917 = vmatmul.mubr.msk.bf16.vlgmr.msra.gmra.mrb[4].mxu1 %vm512_vm0, %v281_v58 }
  0x56   : > { %940 = vmatpush3.bf16.msra.mxu0 %v1025_v13 }
  0x57   : > { %941 = vmatprep.subr.bf16.mxu0 %v1056_v11 }
  0x5a   : > { %942 = vmatpush3.bf16.msra.mxu0 %v1029_v14 }
  0x5b   : > { %943 = vmatprep.subr.bf16.mxu0 %v1056_v11 }
  0x5e   : > { %944 = vmatpush3.bf16.msra.mxu0 %v1030_v15 }
  0x61   : > { %946 = vmatmul.mubr.msk.bf16.vlgmr.msra.gmra.mrb[8].mxu0 %vm512_vm0, %v281_v58 }
  0xad   : > { %v326_v16 = vpop.permute.xlu0 %325 }
 0x114   : > { %v550_v17 = vpop.f32.mrb[0].mxu0 }
 0x115   : > { %v551_v18 = vadd.f32 %v550_v17, %v326_v16  ;;  %v552_v19 = vpop.f32.mrb[1].mxu0 }
 0x116   : > { %v553_v20 = vadd.f32 %v552_v19, %v326_v16  ;;  %v554_v21 = vpop.f32.mrb[2].mxu0  ;;  %v591_v26 = vpop.f32.mrb[0].mxu1 }
 0x117   : > { %vm720_vm2 = vcmp.ge.f32.partialorder %v551_v18, 0.0  ;;  %v729_v22 = vmul.f32 0.01, %v551_v18  ;;  %v555_v23 = vpop.f32.mrb[3].mxu0  ;;  %v592_v28 = vadd.f32 %v591_v26, %v326_v16  ;;  %v593_v29 = vpop.f32.mrb[1].mxu1 }
 0x118   : > { %vm721_vm3 = vcmp.ge.f32.partialorder %v553_v20, 0.0  ;;  %v730_v24 = vmul.f32 0.01, %v553_v20  ;;  %v594_v31 = vadd.f32 %v593_v29, %v326_v16  ;;  %v595_v32 = vpop.f32.mrb[2].mxu1 }
 0x119   : > { %v738_v25 = vsel %vm720_vm2, %v551_v18, %v729_v22  ;;  %vm722_vm4 = vcmp.ge.f32.partialorder %v592_v28, 0.0  ;;  %v731_v33 = vmul.f32 0.01, %v592_v28  ;;  %v596_v34 = vpop.f32.mrb[3].mxu1 }
 0x11a   : > { %v739_v27 = vsel %vm721_vm3, %v553_v20, %v730_v24  ;;  %vm723_vm5 = vcmp.ge.f32.partialorder %v594_v31, 0.0  ;;  %v732_v35 = vmul.f32 0.01, %v594_v31 }
 0x11b   : > { %v927_v30 = vpack.c.bf16 %v739_v27, %v738_v25  ;;  %v740_v36 = vsel %vm722_vm4, %v592_v28, %v731_v33 }
 0x11c   : > { %v741_v37 = vsel %vm723_vm5, %v594_v31, %v732_v35 }
 0x11d   : > { %784 = vst [vmem:[%s1258_s11] sm:$0xff] %v927_v30  ;;  %v928_v38 = vpack.c.bf16 %v741_v37, %v740_v36 }
 0x11f   : > { %785 = vst [vmem:[%s1258_s11 + $0x8] sm:$0xff] %v928_v38 }
 0x124   : > { %v632_v39 = vpop.f32.mrb[4].mxu0 }
 0x125   : > { %v633_v40 = vadd.f32 %v632_v39, %v326_v16  ;;  %v634_v41 = vpop.f32.mrb[5].mxu0 }
 0x126   : > { %v635_v42 = vadd.f32 %v634_v41, %v326_v16  ;;  %v636_v43 = vpop.f32.mrb[6].mxu0  ;;  %v673_v48 = vpop.f32.mrb[4].mxu1 }
 0x127   : > { %vm724_vm6 = vcmp.ge.f32.partialorder %v633_v40, 0.0  ;;  %v733_v44 = vmul.f32 0.01, %v633_v40  ;;  %v637_v45 = vpop.f32.mrb[7].mxu0  ;;  %v674_v50 = vadd.f32 %v673_v48, %v326_v16  ;;  %v675_v51 = vpop.f32.mrb[5].mxu1 }
 0x128   : > { %vm725_vm7 = vcmp.ge.f32.partialorder %v635_v42, 0.0  ;;  %v734_v46 = vmul.f32 0.01, %v635_v42  ;;  %v676_v53 = vadd.f32 %v675_v51, %v326_v16  ;;  %v677_v54 = vpop.f32.mrb[6].mxu1 }
 0x129   : > { %v742_v47 = vsel %vm724_vm6, %v633_v40, %v733_v44  ;;  %vm726_vm8 = vcmp.ge.f32.partialorder %v674_v50, 0.0  ;;  %v735_v55 = vmul.f32 0.01, %v674_v50  ;;  %v678_v56 = vpop.f32.mrb[7].mxu1 }
 0x12a   : > { %v743_v49 = vsel %vm725_vm7, %v635_v42, %v734_v46  ;;  %vm727_vm9 = vcmp.ge.f32.partialorder %v676_v53, 0.0  ;;  %v736_v57 = vmul.f32 0.01, %v676_v53 }
 0x12b   : > { %v929_v52 = vpack.c.bf16 %v743_v49, %v742_v47  ;;  %v744_v58 = vsel %vm726_vm8, %v674_v50, %v735_v55 }
 0x12c   : > { %v745_v59 = vsel %vm727_vm9, %v676_v53, %v736_v57 }
 0x12d   : > { %786 = vst [vmem:[%s1258_s11 + $0x10] sm:$0xff] %v929_v52  ;;  %v930_v60 = vpack.c.bf16 %v745_v59, %v744_v58 }
 0x12f   : > { %787 = vst [vmem:[%s1258_s11 + $0x18] sm:$0xff] %v930_v60 }
 0x134   : > { %v714_v61 = vpop.f32.mrb[8].mxu0 }
 0x135   : > { %v715_v62 = vadd.f32 %v714_v61, %v326_v16  ;;  %v947_v63 = vpop.f32.mrb[9].mxu0 }
 0x136   : > { %v717_v0 = vpop.f32.mrb[10].mxu0 }
 0x137   : > { %vm728_vm10 = vcmp.ge.f32.partialorder %v715_v62, 0.0  ;;  %v737_v1 = vmul.f32 0.01, %v715_v62  ;;  %v948_v2 = vpop.f32.mrb[11].mxu0 }
 0x139   : > { %v746_v3 = vsel %vm728_vm10, %v715_v62, %v737_v1 }
 0x13a   : > { %v931_v4 = vpack.c.bf16 %v746_v3, %v746_v3 }
 0x13c   : > { %788 = vst [vmem:[%s1258_s11 + $0x20] sm:$0xf] %v931_v4 }
 0x13d PF: > { %p10_p9 = scmp.ge.s32.totalorder %s1095_s16, 5   ;;  %s1279_s12 = smov %s1049_s13 }
 0x13e   : > { %s1280_s13 = smov %s1104_s19  ;;  %s1281_s14 = smov %s1095_s16 }
 0x13f   :  { %12 = sbr.rel (!%p10_p9) target bundleno = 2 (0x2), region = 99 }

// kernel: netD_forward.8
= control target key start
LH: loop header
LB: loop body
LE: loop exit
PB: predicated region body
PF: predicated region fallthrough
CT: control target
= control target key end

     0   :  { %v843_v1 = vmov 0   ;;  %v844_v37 = vmov 0.0   ;;  %vm845_vm0 = vmmov 0   ;;  %vm646_vm12 = vcmask 781312   ;;  %s1088_s1 = inlined_call_operand.vmem [shape: bf16[128,864], index: 1, kind: input, shape index: {}]   ;;  %s1089_s0 = inlined_call_operand.vmem [shape: bf16[16,128], index: 0, kind: input, shape index: {}]   ;;  %s1090_s2 = inlined_call_operand.vmem [shape: f32[16,1], index: 2, kind: input, shape index: {}]   ;;  %s1091_s3 = inlined_call_operand.vmem [shape: bf16[16,864], index: 3, kind: output, shape index: {}]  }
   0x1   :  { %v762_v0 = vld [vmem:[%s1088_s1 + $0x4] ss:$28 sps:$4 sm:$0xff]   ;;  %419 = vmatprep.mubr.bf16.mxu0 %v843_v1  ;;  %462 = vmatprep.mubr.bf16.mxu1 %v843_v1  ;;  %v764_v2 = vld [vmem:[%s1088_s1 + $0xc] ss:$28 sps:$4 sm:$0xff]   ;;  %v768_v5 = vld [vmem:[%s1088_s1 + $0x3c] ss:$28 sps:$4 sm:$0xff]  }
   0x2   :  { %761 = vset.pattern.permute.xlu0 %v843_v1  ;;  %387 = vmatprep.subr.bf16.mxu0 %v762_v0  ;;  %v766_v3 = vld [vmem:[%s1088_s1] ss:$28 sps:$4 sm:$0xff]   ;;  %v767_v4 = vld [vmem:[%s1088_s1 + $0x8] ss:$28 sps:$4 sm:$0xff]   ;;  %v772_v7 = vld [vmem:[%s1088_s1 + $0x38] ss:$28 sps:$4 sm:$0xff]  }
   0x3   :  { %430 = vmatprep.subr.bf16.mxu1 %v764_v2  ;;  %388 = vmatpush1.bf16.msra.mxu0 %v766_v3  ;;  %v770_v6 = vld [vmem:[%s1088_s1 + $0x44] ss:$28 sps:$4 sm:$0xff]   ;;  %v774_v9 = vld [vmem:[%s1088_s1 + $0x74] ss:$28 sps:$4 sm:$0xff]   ;;  %v776_v10 = vld [vmem:[%s1088_s1 + $0x7c] ss:$28 sps:$4 sm:$0xff]  }
   0x4   :  { %431 = vmatpush1.bf16.msra.mxu1 %v767_v4  ;;  %389 = vmatprep.subr.bf16.mxu0 %v768_v5  ;;  %v773_v8 = vld [vmem:[%s1088_s1 + $0x40] ss:$28 sps:$4 sm:$0xff]   ;;  %v778_v11 = vld [vmem:[%s1088_s1 + $0x70] ss:$28 sps:$4 sm:$0xff]   ;;  %v779_v12 = vld [vmem:[%s1088_s1 + $0x78] ss:$28 sps:$4 sm:$0xff]  }
   0x5   :  { %432 = vmatprep.subr.bf16.mxu1 %v770_v6  ;;  %v780_v13 = vld [vmem:[%s1088_s1 + $0xac] ss:$28 sps:$4 sm:$0xff]   ;;  %v782_v14 = vld [vmem:[%s1088_s1 + $0xb4] ss:$28 sps:$4 sm:$0xff]   ;;  %v786_v17 = vld [vmem:[%s1088_s1 + $0xe4] ss:$28 sps:$4 sm:$0xff]  }
   0x6   :  { %v784_v15 = vld [vmem:[%s1088_s1 + $0xa8] ss:$28 sps:$4 sm:$0xff]   ;;  %v785_v16 = vld [vmem:[%s1088_s1 + $0xb0] ss:$28 sps:$4 sm:$0xff]   ;;  %v790_v19 = vld [vmem:[%s1088_s1 + $0xe0] ss:$28 sps:$4 sm:$0xff]  }
   0x7   :  { %390 = vmatpush1.bf16.msra.mxu0 %v772_v7  ;;  %v788_v18 = vld [vmem:[%s1088_s1 + $0xec] ss:$28 sps:$4 sm:$0xff]   ;;  %v792_v21 = vld [vmem:[%s1088_s1 + $0x11c] ss:$28 sps:$4 sm:$0xff]   ;;  %v794_v22 = vld [vmem:[%s1088_s1 + $0x124] ss:$28 sps:$4 sm:$0xff]  }
   0x8   :  { %433 = vmatpush1.bf16.msra.mxu1 %v773_v8  ;;  %391 = vmatprep.subr.bf16.mxu0 %v774_v9  ;;  %v791_v20 = vld [vmem:[%s1088_s1 + $0xe8] ss:$28 sps:$4 sm:$0xff]   ;;  %v796_v23 = vld [vmem:[%s1088_s1 + $0x118] ss:$28 sps:$4 sm:$0xff]   ;;  %v797_v24 = vld [vmem:[%s1088_s1 + $0x120] ss:$28 sps:$4 sm:$0xff]  }
   0x9   :  { %434 = vmatprep.subr.bf16.mxu1 %v776_v10  ;;  %v798_v25 = vld [vmem:[%s1088_s1 + $0x154] ss:$28 sps:$4 sm:$0xff]   ;;  %v800_v26 = vld [vmem:[%s1088_s1 + $0x15c] ss:$28 sps:$4 sm:$0xff]   ;;  %v804_v29 = vld [vmem:[%s1088_s1 + $0x18c] ss:$28 sps:$4 sm:$0xff]  }
   0xa   :  { %v802_v27 = vld [vmem:[%s1088_s1 + $0x150] ss:$28 sps:$4 sm:$0xff]   ;;  %v803_v28 = vld [vmem:[%s1088_s1 + $0x158] ss:$28 sps:$4 sm:$0xff]   ;;  %v808_v31 = vld [vmem:[%s1088_s1 + $0x188] ss:$28 sps:$4 sm:$0xff]  }
   0xb   :  { %392 = vmatpush1.bf16.msra.mxu0 %v778_v11  ;;  %v806_v30 = vld [vmem:[%s1088_s1 + $0x194] ss:$28 sps:$4 sm:$0xff]   ;;  %v971_v34 = vld [vmem:[%s1089_s0] sm:$0xff]   ;;  %v817_v38 = vld [vmem:[%s1088_s1 + $0x4c] ss:$28 sps:$4 sm:$0xff]  }
   0xc   :  { %435 = vmatpush1.bf16.msra.mxu1 %v779_v12  ;;  %393 = vmatprep.subr.bf16.mxu0 %v780_v13  ;;  %v809_v32 = vld [vmem:[%s1088_s1 + $0x190] ss:$28 sps:$4 sm:$0xff]   ;;  %v814_v36 = vld [vmem:[%s1088_s1 + $0x18] ss:$28 sps:$4 sm:$0xff]   ;;  %v815_v39 = vld [vmem:[%s1088_s1 + $0x48] ss:$28 sps:$4 sm:$0xff]  }
   0xd   :  { %436 = vmatprep.subr.bf16.mxu1 %v782_v14  ;;  %v813_v33 = vld [vmem:[%s1088_s1 + $0x14] ss:$28 sps:$4 sm:$0xff]   ;;  %v821_v41 = vld [vmem:[%s1088_s1 + $0x84] ss:$28 sps:$4 sm:$0xff]   ;;  %v825_v44 = vld [vmem:[%s1088_s1 + $0xbc] ss:$28 sps:$4 sm:$0xff]  }
   0xe   :  { %v811_v35 = vld [vmem:[%s1088_s1 + $0x10] ss:$28 sps:$4 sm:$0xff]   ;;  %v819_v42 = vld [vmem:[%s1088_s1 + $0x80] ss:$28 sps:$4 sm:$0xff]   ;;  %v822_v43 = vld [vmem:[%s1088_s1 + $0x88] ss:$28 sps:$4 sm:$0xff]  }
   0xf   :  { %394 = vmatpush1.bf16.msra.mxu0 %v784_v15  ;;  %v818_v40 = vld [vmem:[%s1088_s1 + $0x50] ss:$28 sps:$4 sm:$0xff]   ;;  %v81_v45 = vld [vmem:[%s1090_s2] sm:$0xff]  ;;  %v823_v47 = vld [vmem:[%s1088_s1 + $0xb8] ss:$28 sps:$4 sm:$0xff]  }
  0x10   :  { %437 = vmatpush1.bf16.msra.mxu1 %v785_v16  ;;  %395 = vmatprep.subr.bf16.mxu0 %v786_v17  ;;  %v82_v46 = vld [vmem:[%s1090_s2 + $0x8] sm:$0xff]  ;;  %v826_v48 = vld [vmem:[%s1088_s1 + $0xc0] ss:$28 sps:$4 sm:$0xff]   ;;  %v829_v49 = vld [vmem:[%s1088_s1 + $0xf4] ss:$28 sps:$4 sm:$0xff]  }
  0x11   :  { %438 = vmatprep.subr.bf16.mxu1 %v788_v18  ;;  %85 = vperm.xlu0 %761, %v81_v45   ;;  %v827_v50 = vld [vmem:[%s1088_s1 + $0xf0] ss:$28 sps:$4 sm:$0xff]   ;;  %v830_v51 = vld [vmem:[%s1088_s1 + $0xf8] ss:$28 sps:$4 sm:$0xff]   ;;  %v831_v53 = vld [vmem:[%s1088_s1 + $0x128] ss:$28 sps:$4 sm:$0xff]  }
  0x12   :  { %v833_v52 = vld [vmem:[%s1088_s1 + $0x12c] ss:$28 sps:$4 sm:$0xff]   ;;  %v837_v55 = vld [vmem:[%s1088_s1 + $0x164] ss:$28 sps:$4 sm:$0xff]   ;;  %v841_v58 = vld [vmem:[%s1088_s1 + $0x19c] ss:$28 sps:$4 sm:$0xff]  }
  0x13   :  { %396 = vmatpush1.bf16.msra.mxu0 %v790_v19  ;;  %v834_v54 = vld [vmem:[%s1088_s1 + $0x130] ss:$28 sps:$4 sm:$0xff]   ;;  %v835_v56 = vld [vmem:[%s1088_s1 + $0x160] ss:$28 sps:$4 sm:$0xff]   ;;  %v838_v57 = vld [vmem:[%s1088_s1 + $0x168] ss:$28 sps:$4 sm:$0xff]  }
  0x14   :  { %439 = vmatpush1.bf16.msra.mxu1 %v791_v20  ;;  %397 = vmatprep.subr.bf16.mxu0 %v792_v21  ;;  %v839_v59 = vld [vmem:[%s1088_s1 + $0x198] ss:$28 sps:$4 sm:$0xff]   ;;  %v842_v60 = vld [vmem:[%s1088_s1 + $0x1a0] ss:$28 sps:$4 sm:$0xff]  }
  0x15   :  { %440 = vmatprep.subr.bf16.mxu1 %v794_v22  ;;  %90 = vperm.xlu0 %761, %v82_v46  }
  0x17   :  { %398 = vmatpush1.bf16.msra.mxu0 %v796_v23 }
  0x18   :  { %441 = vmatpush1.bf16.msra.mxu1 %v797_v24  ;;  %399 = vmatprep.subr.bf16.mxu0 %v798_v25 }
  0x19   :  { %442 = vmatprep.subr.bf16.mxu1 %v800_v26 }
  0x1b   :  { %400 = vmatpush1.bf16.msra.mxu0 %v802_v27 }
  0x1c   :  { %443 = vmatpush1.bf16.msra.mxu1 %v803_v28  ;;  %401 = vmatprep.subr.bf16.mxu0 %v804_v29 }
  0x1d   :  { %444 = vmatprep.subr.bf16.mxu1 %v806_v30 }
  0x1f   :  { %402 = vmatpush1.bf16.msra.mxu0 %v808_v31 }
  0x20   :  { %445 = vmatpush1.bf16.msra.mxu1 %v809_v32  ;;  %473 = vmatprep.subr.bf16.mxu0 %v813_v33 }
  0x21   :  { %738 = vmatprep.subr.bf16.mxu1 %v844_v37 }
  0x22   :  { %420 = vmatmul.mubr.bf16.vlgmr.msra.gmra.mrb[0].mxu0 %v971_v34 }
  0x23   :  { %463 = vmatmul.mubr.bf16.vlgmr.msra.gmra.mrb[0].mxu1 %v971_v34  ;;  %474 = vmatpush1.bf16.msra.mxu0 %v811_v35 }
  0x24   :  { %739 = vmatpush3.bf16.msra.mxu1 %v814_v36  ;;  %475 = vmatprep.subr.bf16.mxu0 %v817_v38 }
  0x25   :  { %740 = vmatprep.subr.bf16.mxu1 %v844_v37  ;;  %505 = vmatprep.mubr.bf16.mxu0 %v843_v1 }
  0x26   :  { %754 = vmatprep.mubr.msk.bf16.mxu1 %vm845_vm0, %v844_v37 }
  0x27   :  { %476 = vmatpush1.bf16.msra.mxu0 %v815_v39 }
  0x28   :  { %741 = vmatpush3.bf16.msra.mxu1 %v818_v40  ;;  %477 = vmatprep.subr.bf16.mxu0 %v821_v41 }
  0x29   :  { %742 = vmatprep.subr.bf16.mxu1 %v844_v37 }
  0x2b   :  { %478 = vmatpush1.bf16.msra.mxu0 %v819_v42 }
  0x2c   :  { %743 = vmatpush3.bf16.msra.mxu1 %v822_v43  ;;  %479 = vmatprep.subr.bf16.mxu0 %v825_v44 }
  0x2d   :  { %744 = vmatprep.subr.bf16.mxu1 %v844_v37 }
  0x2f   :  { %480 = vmatpush1.bf16.msra.mxu0 %v823_v47 }
  0x30   :  { %745 = vmatpush3.bf16.msra.mxu1 %v826_v48  ;;  %481 = vmatprep.subr.bf16.mxu0 %v829_v49 }
  0x31   :  { %746 = vmatprep.subr.bf16.mxu1 %v844_v37 }
  0x33   :  { %482 = vmatpush1.bf16.msra.mxu0 %v827_v50 }
  0x34   :  { %747 = vmatpush3.bf16.msra.mxu1 %v830_v51  ;;  %483 = vmatprep.subr.bf16.mxu0 %v833_v52 }
  0x35   :  { %748 = vmatprep.subr.bf16.mxu1 %v844_v37 }
  0x37   :  { %484 = vmatpush1.bf16.msra.mxu0 %v831_v53 }
  0x38   :  { %749 = vmatpush3.bf16.msra.mxu1 %v834_v54  ;;  %485 = vmatprep.subr.bf16.mxu0 %v837_v55 }
  0x39   :  { %750 = vmatprep.subr.bf16.mxu1 %v844_v37 }
  0x3b   :  { %486 = vmatpush1.bf16.msra.mxu0 %v835_v56 }
  0x3c   :  { %751 = vmatpush3.bf16.msra.mxu1 %v838_v57  ;;  %487 = vmatprep.subr.bf16.mxu0 %v841_v58 }
  0x3d   :  { %752 = vmatprep.subr.bf16.mxu1 %v844_v37 }
  0x3f   :  { %488 = vmatpush1.bf16.msra.mxu0 %v839_v59 }
  0x40   :  { %753 = vmatpush3.bf16.msra.mxu1 %v842_v60 }
  0x42   :  { %506 = vmatmul.mubr.bf16.vlgmr.msra.gmra.mrb[4].mxu0 %v971_v34 }
  0x43   :  { %755 = vmatmul.mubr.bf16.vlgmr.msra.gmra.mrb[4].mxu1 %v971_v34 }
  0x90   :  { %v86_v61 = vpop.permute.xlu0 %85 }
  0x94   :  { %v1053_v62 = vpop.permute.xlu0 %90 }
  0xf5   :  { %v421_v63 = vpop.f32.mrb[0].mxu0 }
  0xf6   :  { %v464_v0 = vpop.f32.mrb[0].mxu1  ;;  %v422_v1 = vadd.f32 %v421_v63, %v86_v61  ;;  %v423_v3 = vpop.f32.mrb[1].mxu0 }
  0xf7   :  { %v465_v2 = vadd.f32 %v464_v0, %v86_v61  ;;  %v466_v4 = vpop.f32.mrb[1].mxu1  ;;  %v424_v5 = vadd.f32 %v423_v3, %v86_v61  ;;  %v425_v7 = vpop.f32.mrb[2].mxu0 }
  0xf8   :  { %v467_v6 = vadd.f32 %v466_v4, %v86_v61  ;;  %v468_v8 = vpop.f32.mrb[2].mxu1  ;;  %vm557_vm1 = vcmp.ge.f32.partialorder %v422_v1, 0.0  ;;  %v571_v9 = vmul.f32 0.01, %v422_v1  ;;  %v426_v15 = vadd.f32 %v425_v7, %v1053_v62  ;;  %v427_v17 = vpop.f32.mrb[3].mxu0 }
  0xf9   :  { %vm559_vm2 = vcmp.ge.f32.partialorder %v465_v2, 0.0  ;;  %v573_v10 = vmul.f32 0.01, %v465_v2  ;;  %vm558_vm3 = vcmp.ge.f32.partialorder %v424_v5, 0.0  ;;  %v572_v11 = vmul.f32 0.01, %v424_v5 }
  0xfa   :  { %vm560_vm4 = vcmp.ge.f32.partialorder %v467_v6, 0.0  ;;  %v574_v12 = vmul.f32 0.01, %v467_v6  ;;  %v585_v13 = vsel %vm557_vm1, %v422_v1, %v571_v9  ;;  %v469_v16 = vadd.f32 %v468_v8, %v1053_v62  ;;  %v470_v18 = vpop.f32.mrb[3].mxu1 }
  0xfb   :  { %v587_v14 = vsel %vm559_vm2, %v465_v2, %v573_v10  ;;  %v586_v19 = vsel %vm558_vm3, %v424_v5, %v572_v11  ;;  %v428_v21 = vadd.f32 %v427_v17, %v1053_v62  ;;  %v471_v22 = vadd.f32 %v470_v18, %v1053_v62 }
  0xfc   :  { %v588_v20 = vsel %vm560_vm4, %v467_v6, %v574_v12  ;;  %v721_v23 = vpack.c.bf16 %v586_v19, %v585_v13  ;;  %vm564_vm5 = vcmp.ge.f32.partialorder %v426_v15, 0.0  ;;  %v578_v25 = vmul.f32 0.01, %v426_v15 }
  0xfd   :  { %v722_v24 = vpack.c.bf16 %v588_v20, %v587_v14  ;;  %vm566_vm6 = vcmp.ge.f32.partialorder %v469_v16, 0.0  ;;  %v580_v26 = vmul.f32 0.01, %v469_v16  ;;  %vm565_vm7 = vcmp.ge.f32.partialorder %v428_v21, 0.0 }
  0xfe   :  { %v579_v27 = vmul.f32 0.01, %v428_v21  ;;  %643 = vst [vmem:[%s1091_s3] sm:$0xff] %v721_v23  ;;  %v592_v28 = vsel %vm564_vm5, %v426_v15, %v578_v25  ;;  %vm567_vm8 = vcmp.ge.f32.partialorder %v471_v22, 0.0  ;;  %v581_v29 = vmul.f32 0.01, %v471_v22 }
  0xff   :  { %644 = vst [vmem:[%s1091_s3 + $0x8] sm:$0xff] %v722_v24  ;;  %v594_v30 = vsel %vm566_vm6, %v469_v16, %v580_v26 }
 0x100   :  { %v593_v31 = vsel %vm565_vm7, %v428_v21, %v579_v27  ;;  %v595_v33 = vsel %vm567_vm8, %v471_v22, %v581_v29 }
 0x101   :  { %v725_v32 = vpack.c.bf16 %v593_v31, %v592_v28  ;;  %v726_v34 = vpack.c.bf16 %v595_v33, %v594_v30 }
 0x103   :  { %648 = vst [vmem:[%s1091_s3 + $0x1c] sm:$0xff] %v725_v32  ;;  %649 = vst [vmem:[%s1091_s3 + $0x24] sm:$0xff] %v726_v34 }
 0x115   :  { %v507_v35 = vpop.f32.mrb[4].mxu0 }
 0x116   :  { %v550_v36 = vpop.f32.mrb[4].mxu1  ;;  %v508_v37 = vadd.f32 %v507_v35, %v86_v61  ;;  %v509_v39 = vpop.f32.mrb[5].mxu0 }
 0x117   :  { %v551_v38 = vadd.f32 %v550_v36, %v86_v61  ;;  %v756_v40 = vpop.f32.mrb[5].mxu1  ;;  %v510_v41 = vadd.f32 %v509_v39, %v86_v61  ;;  %v511_v42 = vpop.f32.mrb[6].mxu0 }
 0x118   :  { %v553_v43 = vpop.f32.mrb[6].mxu1  ;;  %vm561_vm9 = vcmp.ge.f32.partialorder %v508_v37, 0.0  ;;  %v575_v44 = vmul.f32 0.01, %v508_v37  ;;  %v512_v47 = vadd.f32 %v511_v42, %v1053_v62  ;;  %v513_v49 = vpop.f32.mrb[7].mxu0 }
 0x119   :  { %vm563_vm10 = vcmp.ge.f32.partialorder %v551_v38, 0.0  ;;  %v577_v45 = vmul.f32 0.01, %v551_v38  ;;  %vm562_vm11 = vcmp.ge.f32.partialorder %v510_v41, 0.0  ;;  %v576_v46 = vmul.f32 0.01, %v510_v41 }
 0x11a   :  { %v554_v48 = vadd.f32 %v553_v43, %v1053_v62  ;;  %v757_v50 = vpop.f32.mrb[7].mxu1  ;;  %v589_v51 = vsel %vm561_vm9, %v508_v37, %v575_v44  ;;  %v514_v53 = vadd.f32 %v513_v49, %v1053_v62  ;;  %vm568_vm13 = vcmp.ge.f32.partialorder %v512_v47, 0.0 }
 0x11b   :  { %v591_v52 = vsel %vm563_vm10, %v551_v38, %v577_v45  ;;  %v590_v55 = vsel %vm562_vm11, %v510_v41, %v576_v46  ;;  %v582_v56 = vmul.f32 0.01, %v512_v47 }
 0x11c   :  { %v724_v54 = vpack.c.bf16 %v591_v52, %v591_v52  ;;  %v723_v57 = vpack.c.bf16 %v590_v55, %v589_v51  ;;  %vm570_vm14 = vcmp.ge.f32.partialorder %v554_v48, 0.0  ;;  %v584_v58 = vmul.f32 0.01, %v554_v48 }
 0x11d   :  { %vm569_vm15 = vcmp.ge.f32.partialorder %v514_v53, 0.0  ;;  %v596_v59 = vsel %vm568_vm13, %v512_v47, %v582_v56  ;;  %v583_v60 = vmul.f32 0.01, %v514_v53 }
 0x11e   :  { %647 = vst.msk [vmem:[%s1091_s3 + $0x18] sm:$0xf] %vm646_vm12, %v724_v54  ;;  %645 = vst [vmem:[%s1091_s3 + $0x10] sm:$0xff] %v723_v57  ;;  %v598_v61 = vsel %vm570_vm14, %v554_v48, %v584_v58 }
 0x11f   :  { %v728_v62 = vpack.c.bf16 %v598_v61, %v598_v61  ;;  %v597_v63 = vsel %vm569_vm15, %v514_v53, %v583_v60 }
 0x120   :  { %v727_v0 = vpack.c.bf16 %v597_v63, %v596_v59 }
 0x121   :  { %651 = vst.msk [vmem:[%s1091_s3 + $0x34] sm:$0xf] %vm646_vm12, %v728_v62 }
 0x122   :  { %650 = vst [vmem:[%s1091_s3 + $0x2c] sm:$0xff] %v727_v0 }

// kernel: netD_forward.9
= control target key start
LH: loop header
LB: loop body
LE: loop exit
PB: predicated region body
PF: predicated region fallthrough
CT: control target
= control target key end

     0   :  { %v499_v1 = vmov 0   ;;  %vm355_vm0 = vcmask 1043456   ;;  %vm356_vm1 = vcmask 719876   ;;  %s666_s1 = inlined_call_operand.vmem [shape: bf16[256,216], index: 1, kind: input, shape index: {}]   ;;  %s667_s0 = inlined_call_operand.vmem [shape: bf16[32,256], index: 0, kind: input, shape index: {}]   ;;  %s668_s2 = inlined_call_operand.vmem [shape: f32[32,1], index: 2, kind: input, shape index: {}]   ;;  %s669_s3 = inlined_call_operand.vmem [shape: bf16[32,216], index: 3, kind: output, shape index: {}]  }
   0x1   :  { %v445_v0 = vld [vmem:[%s666_s1 + $0x4] ss:$8 sps:$4 sm:$0xff]   ;;  %444 = vset.pattern.permute.xlu1 %v499_v1  ;;  %443 = vset.pattern.permute.xlu0 %v499_v1  ;;  %v447_v2 = vld [vmem:[%s666_s1] ss:$8 sps:$4 sm:$0xff]   ;;  %v448_v3 = vld [vmem:[%s666_s1 + $0x14] ss:$8 sps:$4 sm:$0xff]  }
   0x2   :  { %254 = vmatprep.subr.bf16.mxu0 %v445_v0  ;;  %410 = vmatprep.subr.bf16.mxu1 %v445_v0  ;;  %v450_v4 = vld [vmem:[%s666_s1 + $0x10] ss:$8 sps:$4 sm:$0xff]   ;;  %v451_v5 = vld [vmem:[%s666_s1 + $0x24] ss:$8 sps:$4 sm:$0xff]   ;;  %v453_v6 = vld [vmem:[%s666_s1 + $0x20] ss:$8 sps:$4 sm:$0xff]  }
   0x3   :  { %255 = vmatpush1.bf16.msra.mxu0 %v447_v2  ;;  %426 = vmatpush1.bf16.msra.mxu1 %v447_v2  ;;  %v454_v7 = vld [vmem:[%s666_s1 + $0x34] ss:$8 sps:$4 sm:$0xff]   ;;  %v456_v8 = vld [vmem:[%s666_s1 + $0x30] ss:$8 sps:$4 sm:$0xff]   ;;  %v457_v9 = vld [vmem:[%s666_s1 + $0x44] ss:$8 sps:$4 sm:$0xff]  }
   0x4   :  { %256 = vmatprep.subr.bf16.mxu0 %v448_v3  ;;  %411 = vmatprep.subr.bf16.mxu1 %v448_v3  ;;  %v459_v10 = vld [vmem:[%s666_s1 + $0x40] ss:$8 sps:$4 sm:$0xff]   ;;  %v460_v11 = vld [vmem:[%s666_s1 + $0x54] ss:$8 sps:$4 sm:$0xff]   ;;  %v462_v12 = vld [vmem:[%s666_s1 + $0x50] ss:$8 sps:$4 sm:$0xff]  }
   0x5   :  { %v463_v13 = vld [vmem:[%s666_s1 + $0x64] ss:$8 sps:$4 sm:$0xff]   ;;  %v465_v15 = vld [vmem:[%s666_s1 + $0x60] ss:$8 sps:$4 sm:$0xff]   ;;  %v498_v16 = vld [vmem:[%s667_s0 + $0x14] ss:$8 sps:$4 sm:$0xff]  }
   0x6   :  { %v495_v14 = vld [vmem:[%s667_s0 + $0x4] ss:$8 sps:$4 sm:$0xff]   ;;  %v466_v17 = vld [vmem:[%s666_s1 + $0x74] ss:$8 sps:$4 sm:$0xff]   ;;  %296 = vmatprep.mubr.bf16.mxu1 %v498_v16  ;;  %v468_v20 = vld [vmem:[%s666_s1 + $0x70] ss:$8 sps:$4 sm:$0xff]  }
   0x7   :  { %257 = vmatpush1.bf16.msra.mxu0 %v450_v4  ;;  %427 = vmatpush1.bf16.msra.mxu1 %v450_v4  ;;  %v52_v18 = vld [vmem:[%s668_s2 + $0x10] sm:$0xff]  ;;  %v50_v19 = vld [vmem:[%s668_s2] sm:$0xff]  ;;  %v53_v21 = vld [vmem:[%s668_s2 + $0x18] sm:$0xff] }
   0x8   :  { %258 = vmatprep.subr.bf16.mxu0 %v451_v5  ;;  %412 = vmatprep.subr.bf16.mxu1 %v451_v5  ;;  %v51_v22 = vld [vmem:[%s668_s2 + $0x8] sm:$0xff]  ;;  %v472_v25 = vld [vmem:[%s666_s1 + $0x94] ss:$8 sps:$4 sm:$0xff]   ;;  %v474_v26 = vld [vmem:[%s666_s1 + $0x90] ss:$8 sps:$4 sm:$0xff]  }
   0x9   :  { %286 = vmatprep.mubr.bf16.mxu0 %v495_v14  ;;  %66 = vperm.xlu1 %444, %v52_v18   ;;  %v469_v23 = vld [vmem:[%s666_s1 + $0x84] ss:$8 sps:$4 sm:$0xff]   ;;  %v471_v24 = vld [vmem:[%s666_s1 + $0x80] ss:$8 sps:$4 sm:$0xff]   ;;  %v478_v29 = vld [vmem:[%s666_s1 + $0xb4] ss:$8 sps:$4 sm:$0xff]  }
   0xa   :  { %56 = vperm.xlu0 %443, %v50_v19   ;;  %v475_v27 = vld [vmem:[%s666_s1 + $0xa4] ss:$8 sps:$4 sm:$0xff]   ;;  %v477_v28 = vld [vmem:[%s666_s1 + $0xa0] ss:$8 sps:$4 sm:$0xff]   ;;  %v480_v30 = vld [vmem:[%s666_s1 + $0xb0] ss:$8 sps:$4 sm:$0xff]  }
   0xb   :  { %259 = vmatpush1.bf16.msra.mxu0 %v453_v6  ;;  %428 = vmatpush1.bf16.msra.mxu1 %v453_v6  ;;  %v481_v31 = vld [vmem:[%s666_s1 + $0xc4] ss:$8 sps:$4 sm:$0xff]   ;;  %v483_v32 = vld [vmem:[%s666_s1 + $0xc0] ss:$8 sps:$4 sm:$0xff]   ;;  %v484_v33 = vld [vmem:[%s666_s1 + $0xd4] ss:$8 sps:$4 sm:$0xff]  }
   0xc   :  { %260 = vmatprep.subr.bf16.mxu0 %v454_v7  ;;  %413 = vmatprep.subr.bf16.mxu1 %v454_v7  ;;  %v486_v34 = vld [vmem:[%s666_s1 + $0xd0] ss:$8 sps:$4 sm:$0xff]   ;;  %v487_v35 = vld [vmem:[%s666_s1 + $0xe4] ss:$8 sps:$4 sm:$0xff]   ;;  %v489_v36 = vld [vmem:[%s666_s1 + $0xe0] ss:$8 sps:$4 sm:$0xff]  }
   0xd   :  { %71 = vperm.xlu1 %444, %v53_v21   ;;  %v490_v37 = vld [vmem:[%s666_s1 + $0xf4] ss:$8 sps:$4 sm:$0xff]   ;;  %v492_v38 = vld [vmem:[%s666_s1 + $0xf0] ss:$8 sps:$4 sm:$0xff]   ;;  %v493_v39 = vld [vmem:[%s667_s0] ss:$8 sps:$4 sm:$0xff]  }
   0xe   :  { %61 = vperm.xlu0 %443, %v51_v22   ;;  %v496_v40 = vld [vmem:[%s667_s0 + $0x10] ss:$8 sps:$4 sm:$0xff]   ;;  %vm642_vm6 = vmor %vm356_vm1, %vm355_vm0 }
   0xf   :  { %261 = vmatpush1.bf16.msra.mxu0 %v456_v8  ;;  %429 = vmatpush1.bf16.msra.mxu1 %v456_v8 }
  0x10   :  { %262 = vmatprep.subr.bf16.mxu0 %v457_v9  ;;  %414 = vmatprep.subr.bf16.mxu1 %v457_v9 }
  0x13   :  { %263 = vmatpush1.bf16.msra.mxu0 %v459_v10  ;;  %430 = vmatpush1.bf16.msra.mxu1 %v459_v10 }
  0x14   :  { %264 = vmatprep.subr.bf16.mxu0 %v460_v11  ;;  %415 = vmatprep.subr.bf16.mxu1 %v460_v11 }
  0x17   :  { %265 = vmatpush1.bf16.msra.mxu0 %v462_v12  ;;  %431 = vmatpush1.bf16.msra.mxu1 %v462_v12 }
  0x18   :  { %266 = vmatprep.subr.bf16.mxu0 %v463_v13  ;;  %416 = vmatprep.subr.bf16.mxu1 %v463_v13 }
  0x1b   :  { %267 = vmatpush1.bf16.msra.mxu0 %v465_v15  ;;  %432 = vmatpush1.bf16.msra.mxu1 %v465_v15 }
  0x1c   :  { %268 = vmatprep.subr.bf16.mxu0 %v466_v17  ;;  %417 = vmatprep.subr.bf16.mxu1 %v466_v17 }
  0x1f   :  { %269 = vmatpush1.bf16.msra.mxu0 %v468_v20  ;;  %433 = vmatpush1.bf16.msra.mxu1 %v468_v20 }
  0x20   :  { %270 = vmatprep.subr.bf16.mxu0 %v469_v23  ;;  %418 = vmatprep.subr.bf16.mxu1 %v469_v23 }
  0x23   :  { %271 = vmatpush1.bf16.msra.mxu0 %v471_v24  ;;  %434 = vmatpush1.bf16.msra.mxu1 %v471_v24 }
  0x24   :  { %272 = vmatprep.subr.bf16.mxu0 %v472_v25  ;;  %419 = vmatprep.subr.bf16.mxu1 %v472_v25 }
  0x27   :  { %273 = vmatpush1.bf16.msra.mxu0 %v474_v26  ;;  %435 = vmatpush1.bf16.msra.mxu1 %v474_v26 }
  0x28   :  { %274 = vmatprep.subr.bf16.mxu0 %v475_v27  ;;  %420 = vmatprep.subr.bf16.mxu1 %v475_v27 }
  0x2b   :  { %275 = vmatpush1.bf16.msra.mxu0 %v477_v28  ;;  %436 = vmatpush1.bf16.msra.mxu1 %v477_v28 }
  0x2c   :  { %276 = vmatprep.subr.bf16.mxu0 %v478_v29  ;;  %421 = vmatprep.subr.bf16.mxu1 %v478_v29 }
  0x2f   :  { %277 = vmatpush1.bf16.msra.mxu0 %v480_v30  ;;  %437 = vmatpush1.bf16.msra.mxu1 %v480_v30 }
  0x30   :  { %278 = vmatprep.subr.bf16.mxu0 %v481_v31  ;;  %422 = vmatprep.subr.bf16.mxu1 %v481_v31 }
  0x33   :  { %279 = vmatpush1.bf16.msra.mxu0 %v483_v32  ;;  %438 = vmatpush1.bf16.msra.mxu1 %v483_v32 }
  0x34   :  { %280 = vmatprep.subr.bf16.mxu0 %v484_v33  ;;  %423 = vmatprep.subr.bf16.mxu1 %v484_v33 }
  0x37   :  { %281 = vmatpush1.bf16.msra.mxu0 %v486_v34  ;;  %439 = vmatpush1.bf16.msra.mxu1 %v486_v34 }
  0x38   :  { %282 = vmatprep.subr.bf16.mxu0 %v487_v35  ;;  %424 = vmatprep.subr.bf16.mxu1 %v487_v35 }
  0x3b   :  { %283 = vmatpush1.bf16.msra.mxu0 %v489_v36  ;;  %440 = vmatpush1.bf16.msra.mxu1 %v489_v36 }
  0x3c   :  { %284 = vmatprep.subr.bf16.mxu0 %v490_v37  ;;  %425 = vmatprep.subr.bf16.mxu1 %v490_v37 }
  0x3f   :  { %285 = vmatpush1.bf16.msra.mxu0 %v492_v38  ;;  %441 = vmatpush1.bf16.msra.mxu1 %v492_v38 }
  0x42   :  { %287 = vmatmul.mubr.bf16.vlgmr.msra.gmra.mrb[0].mxu0 %v493_v39  ;;  %297 = vmatmul.mubr.bf16.vlgmr.msra.gmra.mrb[0].mxu1 %v496_v40 }
  0x88   :  { %v67_v41 = vpop.permute.xlu1 %66 }
  0x89   :  { %v57_v42 = vpop.permute.xlu0 %56 }
  0x8c   :  { %v72_v55 = vpop.permute.xlu1 %71 }
  0x8d   :  { %v62_v56 = vpop.permute.xlu0 %61 }
 0x115   :  { %v288_v43 = vpop.f32.mrb[0].mxu0  ;;  %v298_v44 = vpop.f32.mrb[0].mxu1 }
 0x116   :  { %v289_v45 = vadd.f32 %v288_v43, %v57_v42  ;;  %v299_v46 = vadd.f32 %v298_v44, %v67_v41  ;;  %v290_v47 = vpop.f32.mrb[1].mxu0  ;;  %v300_v48 = vpop.f32.mrb[1].mxu1 }
 0x117   :  { %v291_v49 = vadd.f32 %v290_v47, %v57_v42  ;;  %v301_v50 = vadd.f32 %v300_v48, %v67_v41  ;;  %v292_v51 = vpop.f32.mrb[2].mxu0  ;;  %v302_v52 = vpop.f32.mrb[2].mxu1 }
 0x118   :  { %vm307_vm2 = vcmp.ge.f32.partialorder %v289_v45, 0.0  ;;  %v315_v53 = vmul.f32 0.01, %v289_v45  ;;  %vm311_vm3 = vcmp.ge.f32.partialorder %v299_v46, 0.0  ;;  %v319_v54 = vmul.f32 0.01, %v299_v46 }
 0x119   :  { %vm308_vm4 = vcmp.ge.f32.partialorder %v291_v49, 0.0  ;;  %v316_v57 = vmul.f32 0.01, %v291_v49  ;;  %vm312_vm5 = vcmp.ge.f32.partialorder %v301_v50, 0.0  ;;  %v320_v58 = vmul.f32 0.01, %v301_v50 }
 0x11a   :  { %v323_v59 = vsel %vm307_vm2, %v289_v45, %v315_v53  ;;  %v327_v60 = vsel %vm311_vm3, %v299_v46, %v319_v54  ;;  %v293_v61 = vadd.f32 %v292_v51, %v62_v56  ;;  %v303_v62 = vadd.f32 %v302_v52, %v72_v55  ;;  %v294_v63 = vpop.f32.mrb[3].mxu0  ;;  %v304_v0 = vpop.f32.mrb[3].mxu1 }
 0x11b   :  { %v324_v1 = vsel %vm308_vm4, %v291_v49, %v316_v57  ;;  %v328_v3 = vsel %vm312_vm5, %v301_v50, %v320_v58  ;;  %v295_v4 = vadd.f32 %v294_v63, %v62_v56  ;;  %v305_v5 = vadd.f32 %v304_v0, %v72_v55 }
 0x11c   :  { %v406_v6 = vpack.c.bf16 %v324_v1, %v323_v59  ;;  %v408_v7 = vpack.c.bf16 %v328_v3, %v327_v60  ;;  %vm309_vm7 = vcmp.ge.f32.partialorder %v293_v61, 0.0  ;;  %v317_v8 = vmul.f32 0.01, %v293_v61 }
 0x11d   :  { %vm313_vm8 = vcmp.ge.f32.partialorder %v303_v62, 0.0  ;;  %v321_v9 = vmul.f32 0.01, %v303_v62  ;;  %vm310_vm9 = vcmp.ge.f32.partialorder %v295_v4, 0.0  ;;  %v318_v10 = vmul.f32 0.01, %v295_v4 }
 0x11e   :  { %358 = vst.msk [vmem:[%s669_s3] sm:$0xff] %vm642_vm6, %v406_v6  ;;  %360 = vst.msk [vmem:[%s669_s3 + $0x10] sm:$0xff] %vm642_vm6, %v408_v7  ;;  %v325_v11 = vsel %vm309_vm7, %v293_v61, %v317_v8  ;;  %vm314_vm10 = vcmp.ge.f32.partialorder %v305_v5, 0.0  ;;  %v322_v12 = vmul.f32 0.01, %v305_v5 }
 0x11f   :  { %v329_v13 = vsel %vm313_vm8, %v303_v62, %v321_v9  ;;  %v326_v14 = vsel %vm310_vm9, %v295_v4, %v318_v10 }
 0x120   :  { %v407_v15 = vpack.c.bf16 %v326_v14, %v325_v11  ;;  %v330_v16 = vsel %vm314_vm10, %v305_v5, %v322_v12 }
 0x121   :  { %v409_v17 = vpack.c.bf16 %v330_v16, %v329_v13 }
 0x122   :  { %359 = vst.msk [vmem:[%s669_s3 + $0x8] sm:$0xff] %vm642_vm6, %v407_v15 }
 0x123   :  { %361 = vst.msk [vmem:[%s669_s3 + $0x18] sm:$0xff] %vm642_vm6, %v409_v17 }

// kernel: netD_forward.10
= control target key start
LH: loop header
LB: loop body
LE: loop exit
PB: predicated region body
PF: predicated region fallthrough
CT: control target
= control target key end

     0   :  { %v817_v1 = vmov 0   ;;  %vm601_vm1 = vcmask 437248   ;;  %s1038_s1 = inlined_call_operand.vmem [shape: bf16[512,54], index: 1, kind: input, shape index: {}]   ;;  %s1039_s0 = inlined_call_operand.vmem [shape: bf16[64,512], index: 0, kind: input, shape index: {}]   ;;  %s1040_s2 = inlined_call_operand.vmem [shape: f32[64,1], index: 2, kind: input, shape index: {}]   ;;  %s1041_s3 = inlined_call_operand.vmem [shape: bf16[64,54], index: 3, kind: output, shape index: {}]  }
   0x1   :  { %v761_v0 = vld [vmem:[%s1038_s1 + $0x40] sm:$0xff]   ;;  %759 = vset.pattern.permute.xlu0 %v817_v1  ;;  %760 = vset.pattern.permute.xlu1 %v817_v1  ;;  %v765_v5 = vld [vmem:[%s1038_s1 + $0x48] sm:$0xff]   ;;  %v769_v9 = vld [vmem:[%s1038_s1 + $0x50] sm:$0xff]  }
   0x2   :  { %v762_v2 = vld [vmem:[%s1038_s1 + $0xc0] sm:$0xff]   ;;  %678 = vmatprep.subr.bf16.mxu0 %v761_v0  ;;  %v766_v6 = vld [vmem:[%s1038_s1 + $0xc8] sm:$0xff]   ;;  %v770_v10 = vld [vmem:[%s1038_s1 + $0xd0] sm:$0xff]  }
   0x3   :  { %v763_v3 = vld [vmem:[%s1038_s1] sm:$0xff]   ;;  %718 = vmatprep.subr.bf16.mxu1 %v762_v2  ;;  %v767_v7 = vld [vmem:[%s1038_s1 + $0x8] sm:$0xff]   ;;  %v771_v11 = vld [vmem:[%s1038_s1 + $0x10] sm:$0xff]  }
   0x4   :  { %v764_v4 = vld [vmem:[%s1038_s1 + $0x80] sm:$0xff]   ;;  %679 = vmatpush3.bf16.msra.mxu0 %v763_v3  ;;  %v768_v8 = vld [vmem:[%s1038_s1 + $0x88] sm:$0xff]   ;;  %v772_v12 = vld [vmem:[%s1038_s1 + $0x90] sm:$0xff]  }
   0x5   :  { %719 = vmatpush3.bf16.msra.mxu1 %v764_v4  ;;  %680 = vmatprep.subr.bf16.mxu0 %v765_v5  ;;  %v773_v13 = vld [vmem:[%s1038_s1 + $0x58] sm:$0xff]   ;;  %v777_v17 = vld [vmem:[%s1038_s1 + $0x60] sm:$0xff]   ;;  %v781_v21 = vld [vmem:[%s1038_s1 + $0x68] sm:$0xff]  }
   0x6   :  { %720 = vmatprep.subr.bf16.mxu1 %v766_v6  ;;  %v774_v14 = vld [vmem:[%s1038_s1 + $0xd8] sm:$0xff]   ;;  %v778_v18 = vld [vmem:[%s1038_s1 + $0xe0] sm:$0xff]   ;;  %v782_v22 = vld [vmem:[%s1038_s1 + $0xe8] sm:$0xff]  }
   0x7   :  { %v775_v15 = vld [vmem:[%s1038_s1 + $0x18] sm:$0xff]   ;;  %v779_v19 = vld [vmem:[%s1038_s1 + $0x20] sm:$0xff]   ;;  %v783_v23 = vld [vmem:[%s1038_s1 + $0x28] sm:$0xff]  }
   0x8   :  { %681 = vmatpush3.bf16.msra.mxu0 %v767_v7  ;;  %v776_v16 = vld [vmem:[%s1038_s1 + $0x98] sm:$0xff]   ;;  %v780_v20 = vld [vmem:[%s1038_s1 + $0xa0] sm:$0xff]   ;;  %v784_v24 = vld [vmem:[%s1038_s1 + $0xa8] sm:$0xff]  }
   0x9   :  { %721 = vmatpush3.bf16.msra.mxu1 %v768_v8  ;;  %682 = vmatprep.subr.bf16.mxu0 %v769_v9  ;;  %v785_v25 = vld [vmem:[%s1038_s1 + $0x70] sm:$0xff]   ;;  %v789_v29 = vld [vmem:[%s1038_s1 + $0x78] sm:$0xff]   ;;  %v95_v43 = vld [vmem:[%s1040_s2] sm:$0xff] }
   0xa   :  { %722 = vmatprep.subr.bf16.mxu1 %v770_v10  ;;  %v786_v26 = vld [vmem:[%s1038_s1 + $0xf0] sm:$0xff]   ;;  %v790_v30 = vld [vmem:[%s1038_s1 + $0xf8] sm:$0xff]   ;;  %105 = vperm.xlu0 %759, %v95_v43   ;;  %v96_v45 = vld [vmem:[%s1040_s2 + $0x8] sm:$0xff] }
   0xb   :  { %v787_v27 = vld [vmem:[%s1038_s1 + $0x30] sm:$0xff]   ;;  %v791_v31 = vld [vmem:[%s1038_s1 + $0x38] sm:$0xff]   ;;  %v99_v48 = vld [vmem:[%s1040_s2 + $0x20] sm:$0xff] }
   0xc   :  { %683 = vmatpush3.bf16.msra.mxu0 %v771_v11  ;;  %v788_v28 = vld [vmem:[%s1038_s1 + $0xb0] sm:$0xff]   ;;  %v792_v32 = vld [vmem:[%s1038_s1 + $0xb8] sm:$0xff]   ;;  %v100_v51 = vld [vmem:[%s1040_s2 + $0x28] sm:$0xff] }
   0xd   :  { %723 = vmatpush3.bf16.msra.mxu1 %v772_v12  ;;  %684 = vmatprep.subr.bf16.mxu0 %v773_v13  ;;  %v793_v33 = vld [vmem:[%s1039_s0] ss:$16 sps:$4 sm:$0xff]   ;;  %v795_v34 = vld [vmem:[%s1039_s0 + $0x4] ss:$16 sps:$4 sm:$0xff]   ;;  %v796_v35 = vld [vmem:[%s1039_s0 + $0x8] ss:$16 sps:$4 sm:$0xff]  }
   0xe   :  { %724 = vmatprep.subr.bf16.mxu1 %v774_v14  ;;  %v798_v36 = vld [vmem:[%s1039_s0 + $0xc] ss:$16 sps:$4 sm:$0xff]   ;;  %447 = vmatprep.mubr.bf16.mxu0 %v795_v34  ;;  %v799_v37 = vld [vmem:[%s1039_s0 + $0x24] ss:$16 sps:$4 sm:$0xff]   ;;  %v803_v39 = vld [vmem:[%s1039_s0 + $0x20] ss:$16 sps:$4 sm:$0xff]  }
   0xf   :  { %512 = vmatprep.mubr.bf16.mxu1 %v798_v36  ;;  %v801_v38 = vld [vmem:[%s1039_s0 + $0x2c] ss:$16 sps:$4 sm:$0xff]   ;;  %v804_v40 = vld [vmem:[%s1039_s0 + $0x28] ss:$16 sps:$4 sm:$0xff]   ;;  %v805_v41 = vld [vmem:[%s1039_s0 + $0x44] ss:$16 sps:$4 sm:$0xff]   ;;  %110 = vperm.xlu0 %759, %v96_v45  }
  0x10   :  { %685 = vmatpush3.bf16.msra.mxu0 %v775_v15  ;;  %v807_v42 = vld [vmem:[%s1039_s0 + $0x4c] ss:$16 sps:$4 sm:$0xff]   ;;  %v97_v44 = vld [vmem:[%s1040_s2 + $0x10] sm:$0xff]  ;;  %v810_v49 = vld [vmem:[%s1039_s0 + $0x48] ss:$16 sps:$4 sm:$0xff]  }
  0x11   :  { %725 = vmatpush3.bf16.msra.mxu1 %v776_v16  ;;  %686 = vmatprep.subr.bf16.mxu0 %v777_v17  ;;  %v98_v46 = vld [vmem:[%s1040_s2 + $0x18] sm:$0xff]  ;;  %v809_v47 = vld [vmem:[%s1039_s0 + $0x40] ss:$16 sps:$4 sm:$0xff]   ;;  %v811_v50 = vld [vmem:[%s1039_s0 + $0x64] ss:$16 sps:$4 sm:$0xff]  }
  0x12   :  { %726 = vmatprep.subr.bf16.mxu1 %v778_v18  ;;  %115 = vperm.xlu1 %760, %v97_v44   ;;  %v813_v52 = vld [vmem:[%s1039_s0 + $0x6c] ss:$16 sps:$4 sm:$0xff]   ;;  %v101_v53 = vld [vmem:[%s1040_s2 + $0x30] sm:$0xff]  ;;  %v816_v56 = vld [vmem:[%s1039_s0 + $0x68] ss:$16 sps:$4 sm:$0xff]  }
  0x13   :  { %125 = vperm.xlu0 %759, %v99_v48   ;;  %v102_v54 = vld [vmem:[%s1040_s2 + $0x38] sm:$0xff]  ;;  %v815_v55 = vld [vmem:[%s1039_s0 + $0x60] ss:$16 sps:$4 sm:$0xff]  }
  0x14   :  { %687 = vmatpush3.bf16.msra.mxu0 %v779_v19 }
  0x15   :  { %727 = vmatpush3.bf16.msra.mxu1 %v780_v20  ;;  %688 = vmatprep.subr.bf16.mxu0 %v781_v21 }
  0x16   :  { %728 = vmatprep.subr.bf16.mxu1 %v782_v22  ;;  %120 = vperm.xlu1 %760, %v98_v46  }
  0x17   :  { %135 = vperm.xlu0 %759, %v101_v53  }
  0x18   :  { %689 = vmatpush3.bf16.msra.mxu0 %v783_v23 }
  0x19   :  { %729 = vmatpush3.bf16.msra.mxu1 %v784_v24  ;;  %690 = vmatprep.subr.bf16.mxu0 %v785_v25 }
  0x1a   :  { %730 = vmatprep.subr.bf16.mxu1 %v786_v26  ;;  %130 = vperm.xlu1 %760, %v100_v51  }
  0x1c   :  { %691 = vmatpush3.bf16.msra.mxu0 %v787_v27 }
  0x1d   :  { %731 = vmatpush3.bf16.msra.mxu1 %v788_v28  ;;  %692 = vmatprep.subr.bf16.mxu0 %v789_v29 }
  0x1e   :  { %732 = vmatprep.subr.bf16.mxu1 %v790_v30  ;;  %140 = vperm.xlu1 %760, %v102_v54  }
  0x20   :  { %693 = vmatpush3.bf16.msra.mxu0 %v791_v31 }
  0x21   :  { %733 = vmatpush3.bf16.msra.mxu1 %v792_v32 }
  0x23   :  { %448 = vmatmul.mubr.bf16.vlgmr.msra.gmra.mrb[0].mxu0 %v793_v33 }
  0x24   :  { %513 = vmatmul.mubr.bf16.vlgmr.msra.gmra.mrb[0].mxu1 %v796_v35  ;;  %455 = vmatprep.mubr.bf16.mxu0 %v799_v37 }
  0x25   :  { %520 = vmatprep.mubr.bf16.mxu1 %v801_v38 }
  0x2b   :  { %456 = vmatmul.mubr.bf16.gmra.mrb[4].mxu0 %v803_v39 }
  0x2c   :  { %521 = vmatmul.mubr.bf16.gmra.mrb[4].mxu1 %v804_v40  ;;  %463 = vmatprep.mubr.bf16.mxu0 %v805_v41 }
  0x2d   :  { %528 = vmatprep.mubr.bf16.mxu1 %v807_v42 }
  0x33   :  { %464 = vmatmul.mubr.bf16.gmra.mrb[8].mxu0 %v809_v47 }
  0x34   :  { %529 = vmatmul.mubr.bf16.gmra.mrb[8].mxu1 %v810_v49  ;;  %471 = vmatprep.mubr.bf16.mxu0 %v811_v50 }
  0x35   :  { %536 = vmatprep.mubr.bf16.mxu1 %v813_v52 }
  0x3b   :  { %472 = vmatmul.mubr.bf16.gmra.mrb[12].mxu0 %v815_v55 }
  0x3c   :  { %537 = vmatmul.mubr.bf16.gmra.mrb[12].mxu1 %v816_v56 }
  0x89   :  { %v106_v57 = vpop.permute.xlu0 %105 }
  0x8e   :  { %v111_v59 = vpop.permute.xlu0 %110 }
  0x91   :  { %v116_v10 = vpop.permute.xlu1 %115 }
  0x92   :  { %v126_v36 = vpop.permute.xlu0 %125 }
  0x95   :  { %v121_v30 = vpop.permute.xlu1 %120 }
  0x99   :  { %v131_v54 = vpop.permute.xlu1 %130 }
  0xf6   :  { %v694_v58 = vpop.f32.mrb[0].mxu0 }
  0xf7   :  { %v734_v60 = vpop.f32.mrb[0].mxu1  ;;  %v695_v61 = vpop.f32.mrb[1].mxu0 }
  0xf8   :  { %v696_v62 = vadd.f32 %v695_v61, %v694_v58  ;;  %v735_v63 = vpop.f32.mrb[1].mxu1  ;;  %v697_v0 = vpop.f32.mrb[2].mxu0 }
  0xf9   :  { %v736_v1 = vadd.f32 %v735_v63, %v734_v60  ;;  %v737_v2 = vpop.f32.mrb[2].mxu1  ;;  %v698_v3 = vpop.f32.mrb[3].mxu0 }
  0xfa   :  { %v450_v4 = vadd.f32 %v696_v62, %v106_v57  ;;  %v699_v5 = vadd.f32 %v698_v3, %v697_v0  ;;  %v738_v6 = vpop.f32.mrb[3].mxu1  ;;  %v136_v58 = vpop.permute.xlu0 %135 }
  0xfb   :  { %v739_v7 = vadd.f32 %v738_v6, %v737_v2 }
  0xfc   :  { %v515_v8 = vadd.f32 %v736_v1, %v450_v4  ;;  %v453_v9 = vadd.f32 %v699_v5, %v111_v59 }
  0xfe   :  { %vm545_vm0 = vcmp.ge.f32.partialorder %v515_v8, 0.0  ;;  %v553_v11 = vmul.f32 0.01, %v515_v8  ;;  %v518_v12 = vadd.f32 %v739_v7, %v453_v9  ;;  %v700_v13 = vpop.f32.mrb[4].mxu0 }
  0xff   :  { %v740_v14 = vpop.f32.mrb[4].mxu1  ;;  %v701_v15 = vpop.f32.mrb[5].mxu0 }
 0x100   :  { %v561_v16 = vsel %vm545_vm0, %v515_v8, %v553_v11  ;;  %vm546_vm2 = vcmp.ge.f32.partialorder %v518_v12, 0.0  ;;  %v554_v17 = vmul.f32 0.01, %v518_v12  ;;  %v702_v18 = vadd.f32 %v701_v15, %v700_v13  ;;  %v741_v19 = vpop.f32.mrb[5].mxu1  ;;  %v703_v20 = vpop.f32.mrb[6].mxu0 }
 0x101   :  { %v670_v21 = vpack.c.bf16 %v561_v16, %v561_v16  ;;  %v742_v22 = vadd.f32 %v741_v19, %v740_v14  ;;  %v743_v23 = vpop.f32.mrb[6].mxu1  ;;  %v704_v24 = vpop.f32.mrb[7].mxu0 }
 0x102   :  { %v562_v25 = vsel %vm546_vm2, %v518_v12, %v554_v17  ;;  %v458_v26 = vadd.f32 %v702_v18, %v116_v10  ;;  %v705_v27 = vadd.f32 %v704_v24, %v703_v20  ;;  %v744_v28 = vpop.f32.mrb[7].mxu1  ;;  %v141_v13 = vpop.permute.xlu1 %140 }
 0x103   :  { %602 = vst.msk [vmem:[%s1041_s3] sm:$0xf] %vm601_vm1, %v670_v21  ;;  %v671_v29 = vpack.c.bf16 %v562_v25, %v562_v25  ;;  %v745_v31 = vadd.f32 %v744_v28, %v743_v23 }
 0x104   :  { %v523_v32 = vadd.f32 %v742_v22, %v458_v26  ;;  %v461_v33 = vadd.f32 %v705_v27, %v121_v30 }
 0x105   :  { %603 = vst.msk [vmem:[%s1041_s3 + $0x4] sm:$0xf] %vm601_vm1, %v671_v29 }
 0x106   :  { %vm547_vm3 = vcmp.ge.f32.partialorder %v523_v32, 0.0  ;;  %v555_v34 = vmul.f32 0.01, %v523_v32  ;;  %v526_v35 = vadd.f32 %v745_v31, %v461_v33  ;;  %v706_v37 = vpop.f32.mrb[8].mxu0 }
 0x107   :  { %v746_v38 = vpop.f32.mrb[8].mxu1  ;;  %v707_v39 = vpop.f32.mrb[9].mxu0 }
 0x108   :  { %v563_v40 = vsel %vm547_vm3, %v523_v32, %v555_v34  ;;  %vm548_vm4 = vcmp.ge.f32.partialorder %v526_v35, 0.0  ;;  %v556_v41 = vmul.f32 0.01, %v526_v35  ;;  %v708_v42 = vadd.f32 %v707_v39, %v706_v37  ;;  %v747_v43 = vpop.f32.mrb[9].mxu1  ;;  %v709_v44 = vpop.f32.mrb[10].mxu0 }
 0x109   :  { %v672_v45 = vpack.c.bf16 %v563_v40, %v563_v40  ;;  %v748_v46 = vadd.f32 %v747_v43, %v746_v38  ;;  %v749_v47 = vpop.f32.mrb[10].mxu1  ;;  %v710_v48 = vpop.f32.mrb[11].mxu0 }
 0x10a   :  { %v564_v49 = vsel %vm548_vm4, %v526_v35, %v556_v41  ;;  %v466_v50 = vadd.f32 %v708_v42, %v126_v36  ;;  %v711_v51 = vadd.f32 %v710_v48, %v709_v44  ;;  %v750_v52 = vpop.f32.mrb[11].mxu1 }
 0x10b   :  { %604 = vst.msk [vmem:[%s1041_s3 + $0x8] sm:$0xf] %vm601_vm1, %v672_v45  ;;  %v673_v53 = vpack.c.bf16 %v564_v49, %v564_v49  ;;  %v751_v55 = vadd.f32 %v750_v52, %v749_v47 }
 0x10c   :  { %v531_v56 = vadd.f32 %v748_v46, %v466_v50  ;;  %v469_v57 = vadd.f32 %v711_v51, %v131_v54 }
 0x10d   :  { %605 = vst.msk [vmem:[%s1041_s3 + $0xc] sm:$0xf] %vm601_vm1, %v673_v53 }
 0x10e   :  { %vm549_vm5 = vcmp.ge.f32.partialorder %v531_v56, 0.0  ;;  %v557_v59 = vmul.f32 0.01, %v531_v56  ;;  %v534_v60 = vadd.f32 %v751_v55, %v469_v57  ;;  %v712_v61 = vpop.f32.mrb[12].mxu0 }
 0x10f   :  { %v752_v62 = vpop.f32.mrb[12].mxu1  ;;  %v713_v63 = vpop.f32.mrb[13].mxu0 }
 0x110   :  { %v565_v0 = vsel %vm549_vm5, %v531_v56, %v557_v59  ;;  %vm550_vm6 = vcmp.ge.f32.partialorder %v534_v60, 0.0  ;;  %v558_v1 = vmul.f32 0.01, %v534_v60  ;;  %v714_v2 = vadd.f32 %v713_v63, %v712_v61  ;;  %v753_v3 = vpop.f32.mrb[13].mxu1  ;;  %v715_v4 = vpop.f32.mrb[14].mxu0 }
 0x111   :  { %v674_v5 = vpack.c.bf16 %v565_v0, %v565_v0  ;;  %v754_v6 = vadd.f32 %v753_v3, %v752_v62  ;;  %v755_v7 = vpop.f32.mrb[14].mxu1  ;;  %v716_v8 = vpop.f32.mrb[15].mxu0 }
 0x112   :  { %v566_v9 = vsel %vm550_vm6, %v534_v60, %v558_v1  ;;  %v474_v10 = vadd.f32 %v714_v2, %v136_v58  ;;  %v717_v11 = vadd.f32 %v716_v8, %v715_v4  ;;  %v756_v12 = vpop.f32.mrb[15].mxu1 }
 0x113   :  { %606 = vst.msk [vmem:[%s1041_s3 + $0x10] sm:$0xf] %vm601_vm1, %v674_v5  ;;  %v675_v14 = vpack.c.bf16 %v566_v9, %v566_v9  ;;  %v757_v15 = vadd.f32 %v756_v12, %v755_v7 }
 0x114   :  { %v539_v16 = vadd.f32 %v754_v6, %v474_v10  ;;  %v477_v17 = vadd.f32 %v717_v11, %v141_v13 }
 0x115   :  { %607 = vst.msk [vmem:[%s1041_s3 + $0x14] sm:$0xf] %vm601_vm1, %v675_v14 }
 0x116   :  { %vm551_vm7 = vcmp.ge.f32.partialorder %v539_v16, 0.0  ;;  %v559_v18 = vmul.f32 0.01, %v539_v16  ;;  %v542_v19 = vadd.f32 %v757_v15, %v477_v17 }
 0x118   :  { %v567_v20 = vsel %vm551_vm7, %v539_v16, %v559_v18  ;;  %vm552_vm8 = vcmp.ge.f32.partialorder %v542_v19, 0.0  ;;  %v560_v21 = vmul.f32 0.01, %v542_v19 }
 0x119   :  { %v676_v22 = vpack.c.bf16 %v567_v20, %v567_v20 }
 0x11a   :  { %v568_v23 = vsel %vm552_vm8, %v542_v19, %v560_v21 }
 0x11b   :  { %608 = vst.msk [vmem:[%s1041_s3 + $0x18] sm:$0xf] %vm601_vm1, %v676_v22  ;;  %v677_v24 = vpack.c.bf16 %v568_v23, %v568_v23 }
 0x11d   :  { %609 = vst.msk [vmem:[%s1041_s3 + $0x1c] sm:$0xf] %vm601_vm1, %v677_v24 }

// kernel: netD_forward.11
= control target key start
LH: loop header
LB: loop body
LE: loop exit
PB: predicated region body
PF: predicated region fallthrough
CT: control target
= control target key end

     0   :  { %s2108_s0 = inlined_call_operand.vmem [shape: bf16[1,1728], index: 0, kind: input, shape index: {}]   ;;  %s2109_s1 = inlined_call_operand.vmem [shape: bf16[1728,2], index: 1, kind: input, shape index: {}]   ;;  %s2110_s2 = inlined_call_operand.<no memory space> [shape: f32[1,1], index: 2, kind: input, shape index: {}]   ;;  %s2111_s3 = inlined_call_operand.hbm [shape: f32[1,2], index: 3, kind: output, shape index: {}]  }
   0x1   :  { %v8_v0 = vstv %s2110_s2 }
   0x2   :  { %9 = vst [vmem:[#allocation2] sm:$0x1] %v8_v0 }
   0x3   :  { %v1550_v1 = vld [vmem:[%s2109_s1 + $0x40] sm:$0xff]   ;;  %v1684_v3 = vmov 0   ;;  %v1552_v4 = vld [vmem:[%s2109_s1 + $0x48] sm:$0xff]   ;;  %v1554_v6 = vld [vmem:[%s2109_s1 + $0x50] sm:$0xff]   ;;  %v242_v19 = vlaneseq  ;;  %v1685_v27 = vmov 1966171168  }
   0x4   :  { %v1551_v2 = vld [vmem:[%s2109_s1] sm:$0xff]   ;;  %1549 = vset.pattern.permute.xlu0 %v1684_v3  ;;  %1414 = vmatprep.subr.bf16.mxu1 %v1550_v1  ;;  %v1553_v5 = vld [vmem:[%s2109_s1 + $0x8] sm:$0xff]   ;;  %v1555_v7 = vld [vmem:[%s2109_s1 + $0x10] sm:$0xff]   ;;  %v250_v28 = vunpack.c.l.s4 %v1685_v27  ;;  %vm1005_vm0 = vcmask 523264  }
   0x5   :  { %1415 = vmatpush3.bf16.msra.mxu1 %v1551_v2  ;;  %v1556_v8 = vld [vmem:[%s2109_s1 + $0x58] sm:$0xff]   ;;  %v1560_v10 = vld [vmem:[%s2109_s1 + $0x140] sm:$0xff]   ;;  %v1564_v14 = vld [vmem:[%s2109_s1 + $0x148] sm:$0xff]   ;;  %v1774_v24 = vshrl.u32 %v242_v19, 7 }
   0x6   :  { %1416 = vmatprep.subr.bf16.mxu1 %v1552_v4  ;;  %v1557_v9 = vld [vmem:[%s2109_s1 + $0x18] sm:$0xff]   ;;  %v1561_v11 = vld [vmem:[%s2109_s1 + $0x100] sm:$0xff]   ;;  %1458 = vmatprep.subr.bf16.mxu0 %v1560_v10  ;;  %v1565_v15 = vld [vmem:[%s2109_s1 + $0x108] sm:$0xff]   ;;  %v251_v31 = vunpack.c.0.s8 %v250_v28 }
   0x7   :  { %v1558_v12 = vld [vmem:[%s2109_s1 + $0x60] sm:$0xff]   ;;  %1459 = vmatpush3.bf16.msra.mxu0 %v1561_v11  ;;  %v1562_v16 = vld [vmem:[%s2109_s1 + $0x68] sm:$0xff]   ;;  %v1568_v18 = vld [vmem:[%s2109_s1 + $0x150] sm:$0xff]  }
   0x8   :  { %v1559_v13 = vld [vmem:[%s2109_s1 + $0x20] sm:$0xff]   ;;  %1460 = vmatprep.subr.bf16.mxu0 %v1564_v14  ;;  %v1563_v17 = vld [vmem:[%s2109_s1 + $0x28] sm:$0xff]   ;;  %v1569_v20 = vld [vmem:[%s2109_s1 + $0x110] sm:$0xff]   ;;  %v1795_v35 = vsub.s32 %v251_v31, %v1774_v24 }
   0x9   :  { %1417 = vmatpush3.bf16.msra.mxu1 %v1553_v5  ;;  %v1566_v21 = vld [vmem:[%s2109_s1 + $0x70] sm:$0xff]   ;;  %v1572_v23 = vld [vmem:[%s2109_s1 + $0x158] sm:$0xff]   ;;  %v18_v30 = vld [vmem:[%s2108_s0] sm:$0xff] }
   0xa   :  { %1418 = vmatprep.subr.bf16.mxu1 %v1554_v6  ;;  %v1567_v22 = vld [vmem:[%s2109_s1 + $0x30] sm:$0xff]   ;;  %v1570_v25 = vld [vmem:[%s2109_s1 + $0x78] sm:$0xff]   ;;  %v1574_v32 = vld [vmem:[%s2109_s1 + $0xc0] sm:$0xff]   ;;  %v248_v33 = vcombine.high %v18_v30, %v18_v30  ;;  %v255_v37 = vrot.slane %v18_v30, %v1795_v35 }
   0xb   :  { %1461 = vmatpush3.bf16.msra.mxu0 %v1565_v15  ;;  %v1573_v26 = vld [vmem:[%s2109_s1 + $0x118] sm:$0xff]   ;;  %v1576_v34 = vld [vmem:[%s2109_s1 + $0x160] sm:$0xff]   ;;  %v1580_v39 = vld [vmem:[%s2109_s1 + $0x168] sm:$0xff]  }
   0xc   :  { %1462 = vmatprep.subr.bf16.mxu0 %v1568_v18  ;;  %v1571_v29 = vld [vmem:[%s2109_s1 + $0x38] sm:$0xff]   ;;  %v1577_v36 = vld [vmem:[%s2109_s1 + $0x120] sm:$0xff]   ;;  %v262_v38 = vrot.slane %v248_v33, %v1795_v35  ;;  %v263_v40 = vcombine.high %v255_v37, %v255_v37  ;;  %v1581_v41 = vld [vmem:[%s2109_s1 + $0x128] sm:$0xff]   ;;  %v1809_v43 = vrot.slane %v255_v37, %v1795_v35 }
   0xd   :  { %1419 = vmatpush3.bf16.msra.mxu1 %v1555_v7  ;;  %v1575_v44 = vld [vmem:[%s2109_s1 + $0x80] sm:$0xff]   ;;  %v1578_v46 = vld [vmem:[%s2109_s1 + $0xc8] sm:$0xff]   ;;  %v1584_v48 = vld [vmem:[%s2109_s1 + $0x170] sm:$0xff]  }
   0xe   :  { %1420 = vmatprep.subr.bf16.mxu1 %v1556_v8  ;;  %v264_v42 = vcombine.high %v262_v38, %v262_v38  ;;  %v285_v45 = vrot.slane %v263_v40, %v1795_v35  ;;  %v1585_v50 = vld [vmem:[%s2109_s1 + $0x130] sm:$0xff]   ;;  %v1579_v51 = vld [vmem:[%s2109_s1 + $0x88] sm:$0xff]   ;;  %v1588_v53 = vld [vmem:[%s2109_s1 + $0x178] sm:$0xff]   ;;  %v1845_v56 = vrot.slane %v262_v38, %v1795_v35 }
   0xf   :  { %1463 = vmatpush3.bf16.msra.mxu0 %v1569_v20  ;;  %v1582_v52 = vld [vmem:[%s2109_s1 + $0xd0] sm:$0xff]   ;;  %v1589_v54 = vld [vmem:[%s2109_s1 + $0x138] sm:$0xff]   ;;  %v1593_v58 = vld [vmem:[%s2109_s1 + $0x240] sm:$0xff]  }
  0x10   :  { %1464 = vmatprep.subr.bf16.mxu0 %v1572_v23  ;;  %v1819_v47 = vrot.slane %v264_v42, %v1795_v35  ;;  %v295_v49 = vcombine.high %v285_v45, %v285_v45  ;;  %1041 = vmatprep.mubr.bf16.mxu1 %v285_v45  ;;  %v1583_v55 = vld [vmem:[%s2109_s1 + $0x90] sm:$0xff]   ;;  %v1586_v57 = vld [vmem:[%s2109_s1 + $0xd8] sm:$0xff]   ;;  %v1594_v59 = vld [vmem:[%s2109_s1 + $0x200] sm:$0xff]  }
  0x11   :  { %1421 = vmatpush3.bf16.msra.mxu1 %v1557_v9  ;;  %v1587_v60 = vld [vmem:[%s2109_s1 + $0x98] sm:$0xff]   ;;  %v1590_v61 = vld [vmem:[%s2109_s1 + $0xe0] sm:$0xff]   ;;  %v1597_v62 = vld [vmem:[%s2109_s1 + $0x248] sm:$0xff]  }
  0x12   :  { %1422 = vmatprep.subr.bf16.mxu1 %v1558_v12  ;;  %1121 = vmatprep.mubr.bf16.mxu0 %v1819_v47  ;;  %v1598_v63 = vld [vmem:[%s2109_s1 + $0x208] sm:$0xff]   ;;  %v1591_v0 = vld [vmem:[%s2109_s1 + $0xa0] sm:$0xff]   ;;  %v1601_v2 = vld [vmem:[%s2109_s1 + $0x250] sm:$0xff]   ;;  %v296_v20 = vcombine.high %v1819_v47, %v1819_v47 }
  0x13   :  { %1465 = vmatpush3.bf16.msra.mxu0 %v1573_v26  ;;  %v1595_v1 = vld [vmem:[%s2109_s1 + $0xe8] sm:$0xff]   ;;  %v1602_v4 = vld [vmem:[%s2109_s1 + $0x210] sm:$0xff]   ;;  %v1605_v7 = vld [vmem:[%s2109_s1 + $0x258] sm:$0xff]  }
  0x14   :  { %1466 = vmatprep.subr.bf16.mxu0 %v1576_v34  ;;  %v1596_v5 = vld [vmem:[%s2109_s1 + $0xa8] sm:$0xff]   ;;  %v1599_v6 = vld [vmem:[%s2109_s1 + $0xf0] sm:$0xff]   ;;  %v1606_v8 = vld [vmem:[%s2109_s1 + $0x218] sm:$0xff]  }
  0x15   :  { %1423 = vmatpush3.bf16.msra.mxu1 %v1559_v13  ;;  %v1600_v9 = vld [vmem:[%s2109_s1 + $0xb0] sm:$0xff]   ;;  %v1603_v10 = vld [vmem:[%s2109_s1 + $0xf8] sm:$0xff]   ;;  %v1609_v11 = vld [vmem:[%s2109_s1 + $0x260] sm:$0xff]  }
  0x16   :  { %1424 = vmatprep.subr.bf16.mxu1 %v1562_v16  ;;  %v1610_v12 = vld [vmem:[%s2109_s1 + $0x220] sm:$0xff]   ;;  %v1604_v13 = vld [vmem:[%s2109_s1 + $0xb8] sm:$0xff]   ;;  %v1613_v15 = vld [vmem:[%s2109_s1 + $0x268] sm:$0xff]  }
  0x17   :  { %1467 = vmatpush3.bf16.msra.mxu0 %v1577_v36  ;;  %v1607_v14 = vld [vmem:[%s2109_s1 + $0x1c0] sm:$0xff]   ;;  %v1614_v16 = vld [vmem:[%s2109_s1 + $0x228] sm:$0xff]   ;;  %v1621_v26 = vld [vmem:[%s2109_s1 + $0x278] sm:$0xff]  }
  0x18   :  { %1468 = vmatprep.subr.bf16.mxu0 %v1580_v39  ;;  %v1608_v18 = vld [vmem:[%s2109_s1 + $0x180] sm:$0xff]   ;;  %v1611_v19 = vld [vmem:[%s2109_s1 + $0x1c8] sm:$0xff]   ;;  %v1622_v27 = vld [vmem:[%s2109_s1 + $0x238] sm:$0xff]  }
  0x19   :  { %1425 = vmatpush3.bf16.msra.mxu1 %v1563_v17  ;;  %v293_v17 = vcombine.high %v1809_v43, %v1809_v43  ;;  %v1612_v23 = vld [vmem:[%s2109_s1 + $0x188] sm:$0xff]   ;;  %v1616_v28 = vld [vmem:[%s2109_s1 + $0x190] sm:$0xff]   ;;  %v1619_v30 = vld [vmem:[%s2109_s1 + $0x1d8] sm:$0xff]  }
  0x1a   :  { %1426 = vmatprep.subr.bf16.mxu1 %v1566_v21  ;;  %v1617_v21 = vld [vmem:[%s2109_s1 + $0x270] sm:$0xff]   ;;  %v1620_v33 = vld [vmem:[%s2109_s1 + $0x198] sm:$0xff]   ;;  %v1623_v37 = vld [vmem:[%s2109_s1 + $0x1e0] sm:$0xff]  }
  0x1b   :  { %1469 = vmatpush3.bf16.msra.mxu0 %v1581_v41  ;;  %v1626_v40 = vld [vmem:[%s2109_s1 + $0x300] sm:$0xff]   ;;  %v1629_v45 = vld [vmem:[%s2109_s1 + $0x308] sm:$0xff]   ;;  %v1630_v47 = vld [vmem:[%s2109_s1 + $0x1f0] sm:$0xff]  }
  0x1c   :  { %1470 = vmatprep.subr.bf16.mxu0 %v1584_v48  ;;  %v1624_v42 = vld [vmem:[%s2109_s1 + $0x1a0] sm:$0xff]   ;;  %v1632_v48 = vld [vmem:[%s2109_s1 + $0x310] sm:$0xff]  }
  0x1d   :  { %1427 = vmatpush3.bf16.msra.mxu1 %v1567_v22  ;;  %v1618_v22 = vld [vmem:[%s2109_s1 + $0x230] sm:$0xff]  }
  0x1e   :  { %1428 = vmatprep.subr.bf16.mxu1 %v1570_v25  ;;  %v1615_v25 = vld [vmem:[%s2109_s1 + $0x1d0] sm:$0xff]  }
  0x1f   :  { %1471 = vmatpush3.bf16.msra.mxu0 %v1585_v50  ;;  %v1633_v50 = vld [vmem:[%s2109_s1 + $0x1f8] sm:$0xff]  }
  0x20   :  { %1472 = vmatprep.subr.bf16.mxu0 %v1588_v53  ;;  %v1636_v53 = vld [vmem:[%s2109_s1 + $0x2c0] sm:$0xff]  }
  0x21   :  { %1429 = vmatpush3.bf16.msra.mxu1 %v1571_v29  ;;  %v19_v29 = vld [vmem:[%s2108_s0 + $0x8] sm:$0x3f] }
  0x22   :  { %1436 = vmatprep.subr.bf16.mxu1 %v1574_v32  ;;  %v297_v31 = vcombine.high %v19_v29, %v19_v29  ;;  %v304_v32 = vrot.slane %v19_v29, %v1795_v35 }
  0x23   :  { %1473 = vmatpush3.bf16.msra.mxu0 %v1589_v54  ;;  %v1638_v54 = vld [vmem:[%s2109_s1 + $0x320] sm:$0xff]  }
  0x24   :  { %1042 = vmatmul.mubr.bf16.vlgmr.msra.gmra.mrb[0].mxu1 %v1809_v43  ;;  %1502 = vmatprep.subr.bf16.mxu0 %v1593_v58  ;;  %v312_v34 = vcombine.high %v304_v32, %v304_v32  ;;  %v1960_v36 = vrot.slane %v297_v31, %v1795_v35  ;;  %v1966_v38 = vrot.slane %v304_v32, %v1795_v35  ;;  %v1639_v58 = vld [vmem:[%s2109_s1 + $0x2c8] sm:$0xff]  }
  0x25   :  { %1437 = vmatpush3.bf16.msra.mxu1 %v1575_v44  ;;  %1081 = vmatprep.mubr.bf16.mxu1 %v295_v49  ;;  %v1627_v44 = vld [vmem:[%s2109_s1 + $0x1e8] sm:$0xff]   ;;  %v1631_v49 = vld [vmem:[%s2109_s1 + $0x1b0] sm:$0xff]  }
  0x26   :  { %1438 = vmatprep.subr.bf16.mxu1 %v1578_v46  ;;  %1122 = vmatmul.mubr.bf16.vlgmr.msra.gmra.mrb[0].mxu0 %v1845_v56  ;;  %v334_v39 = vrot.slane %v312_v34, %v1795_v35  ;;  %v313_v41 = vcombine.high %v1960_v36, %v1960_v36  ;;  %v1628_v46 = vld [vmem:[%s2109_s1 + $0x1a8] sm:$0xff]  }
  0x27   :  { %1503 = vmatpush3.bf16.msra.mxu0 %v1594_v59 }
  0x28   :  { %1504 = vmatprep.subr.bf16.mxu0 %v1597_v62  ;;  %1201 = vmatprep.mubr.bf16.mxu0 %v334_v39  ;;  %v341_v43 = vrot.slane %v313_v41, %v1795_v35  ;;  %v343_v59 = vcombine.high %v334_v39, %v334_v39  ;;  %v1642_v62 = vld [vmem:[%s2109_s1 + $0x2d0] sm:$0xff]  }
  0x29   :  { %1439 = vmatpush3.bf16.msra.mxu1 %v1579_v51  ;;  %v1635_v51 = vld [vmem:[%s2109_s1 + $0x318] sm:$0xff]  }
  0x2a   :  { %1440 = vmatprep.subr.bf16.mxu1 %v1582_v52  ;;  %v1634_v52 = vld [vmem:[%s2109_s1 + $0x1b8] sm:$0xff]  }
  0x2b   :  { %1505 = vmatpush3.bf16.msra.mxu0 %v1598_v63  ;;  %v1644_v63 = vld [vmem:[%s2109_s1 + $0x330] sm:$0xff]  }
  0x2c   :  { %1506 = vmatprep.subr.bf16.mxu0 %v1601_v2  ;;  %v1647_v2 = vld [vmem:[%s2109_s1 + $0x338] sm:$0xff]  }
  0x2d   :  { %1441 = vmatpush3.bf16.msra.mxu1 %v1583_v55  ;;  %v294_v55 = vcombine.high %v1845_v56, %v1845_v56  ;;  %v1640_v56 = vld [vmem:[%s2109_s1 + $0x288] sm:$0xff]  }
  0x2e   :  { %1442 = vmatprep.subr.bf16.mxu1 %v1586_v57  ;;  %v1637_v57 = vld [vmem:[%s2109_s1 + $0x280] sm:$0xff]  }
  0x2f   :  { %1507 = vmatpush3.bf16.msra.mxu0 %v1602_v4 }
  0x30   :  { %1508 = vmatprep.subr.bf16.mxu0 %v1605_v7 }
  0x31   :  { %1443 = vmatpush3.bf16.msra.mxu1 %v1587_v60  ;;  %v1641_v60 = vld [vmem:[%s2109_s1 + $0x328] sm:$0xff]  }
  0x32   :  { %1444 = vmatprep.subr.bf16.mxu1 %v1590_v61  ;;  %v236_v61 = vld [vmem:[#allocation2] sm:$0x1] }
  0x33   :  { %1509 = vmatpush3.bf16.msra.mxu0 %v1606_v8  ;;  %239 = vperm.xlu0 %1549, %v236_v61  }
  0x34   :  { %1510 = vmatprep.subr.bf16.mxu0 %v1609_v11 }
  0x35   :  { %1445 = vmatpush3.bf16.msra.mxu1 %v1591_v0  ;;  %v1643_v0 = vld [vmem:[%s2109_s1 + $0x290] sm:$0xff]  }
  0x36   :  { %1446 = vmatprep.subr.bf16.mxu1 %v1595_v1  ;;  %v1645_v1 = vld [vmem:[%s2109_s1 + $0x2d8] sm:$0xff]  }
  0x37   :  { %1511 = vmatpush3.bf16.msra.mxu0 %v1610_v12 }
  0x38   :  { %1512 = vmatprep.subr.bf16.mxu0 %v1613_v15 }
  0x39   :  { %1447 = vmatpush3.bf16.msra.mxu1 %v1596_v5 }
  0x3a   :  { %1448 = vmatprep.subr.bf16.mxu1 %v1599_v6 }
  0x3b   :  { %1513 = vmatpush3.bf16.msra.mxu0 %v1614_v16 }
  0x3c   :  { %1514 = vmatprep.subr.bf16.mxu0 %v1617_v21 }
  0x3d   :  { %1449 = vmatpush3.bf16.msra.mxu1 %v1600_v9 }
  0x3e   :  { %1450 = vmatprep.subr.bf16.mxu1 %v1603_v10 }
  0x3f   :  { %1515 = vmatpush3.bf16.msra.mxu0 %v1618_v22 }
  0x40   :  { %1516 = vmatprep.subr.bf16.mxu0 %v1621_v26 }
  0x41   :  { %1451 = vmatpush3.bf16.msra.mxu1 %v1604_v13 }
  0x42   :  { %1480 = vmatprep.subr.bf16.mxu1 %v1607_v14 }
  0x43   :  { %1517 = vmatpush3.bf16.msra.mxu0 %v1622_v27 }
  0x44   :  { %1082 = vmatmul.mubr.bf16.vlgmr.msra.gmra.mrb[4].mxu1 %v293_v17  ;;  %1249 = vmatprep.subr.bf16.mxu0 %v1684_v3 }
  0x45   :  { %1481 = vmatpush3.bf16.msra.mxu1 %v1608_v18  ;;  %1161 = vmatprep.mubr.bf16.mxu1 %v296_v20 }
  0x46   :  { %1482 = vmatprep.subr.bf16.mxu1 %v1611_v19  ;;  %1202 = vmatmul.mubr.bf16.vlgmr.msra.gmra.mrb[4].mxu0 %v1966_v38 }
  0x47   :  { %1250 = vmatpush1.bf16.msra.mxu0 %v1626_v40  ;;  %1413 = vmatprep.mubr.msk.bf16.mxu0 %vm1005_vm0, %v341_v43 }
  0x48   :  { %1251 = vmatprep.subr.bf16.mxu0 %v1684_v3 }
  0x49   :  { %1483 = vmatpush3.bf16.msra.mxu1 %v1612_v23 }
  0x4a   :  { %1484 = vmatprep.subr.bf16.mxu1 %v1615_v25 }
  0x4b   :  { %1252 = vmatpush1.bf16.msra.mxu0 %v1629_v45 }
  0x4c   :  { %1253 = vmatprep.subr.bf16.mxu0 %v1684_v3 }
  0x4d   :  { %1485 = vmatpush3.bf16.msra.mxu1 %v1616_v28 }
  0x4e   :  { %1486 = vmatprep.subr.bf16.mxu1 %v1619_v30 }
  0x4f   :  { %1254 = vmatpush1.bf16.msra.mxu0 %v1632_v48 }
  0x50   :  { %1255 = vmatprep.subr.bf16.mxu0 %v1684_v3 }
  0x51   :  { %1487 = vmatpush3.bf16.msra.mxu1 %v1620_v33 }
  0x52   :  { %1488 = vmatprep.subr.bf16.mxu1 %v1623_v37 }
  0x53   :  { %1256 = vmatpush1.bf16.msra.mxu0 %v1635_v51 }
  0x54   :  { %1257 = vmatprep.subr.bf16.mxu0 %v1684_v3 }
  0x55   :  { %1489 = vmatpush3.bf16.msra.mxu1 %v1624_v42 }
  0x56   :  { %1490 = vmatprep.subr.bf16.mxu1 %v1627_v44 }
  0x57   :  { %1258 = vmatpush1.bf16.msra.mxu0 %v1638_v54 }
  0x58   :  { %1259 = vmatprep.subr.bf16.mxu0 %v1684_v3 }
  0x59   :  { %1491 = vmatpush3.bf16.msra.mxu1 %v1628_v46 }
  0x5a   :  { %1492 = vmatprep.subr.bf16.mxu1 %v1630_v47 }
  0x5b   :  { %1260 = vmatpush1.bf16.msra.mxu0 %v1641_v60 }
  0x5c   :  { %1261 = vmatprep.subr.bf16.mxu0 %v1684_v3 }
  0x5d   :  { %1493 = vmatpush3.bf16.msra.mxu1 %v1631_v49 }
  0x5e   :  { %1494 = vmatprep.subr.bf16.mxu1 %v1633_v50 }
  0x5f   :  { %1262 = vmatpush1.bf16.msra.mxu0 %v1644_v63 }
  0x60   :  { %1263 = vmatprep.subr.bf16.mxu0 %v1684_v3 }
  0x61   :  { %1495 = vmatpush3.bf16.msra.mxu1 %v1634_v52 }
  0x62   :  { %1524 = vmatprep.subr.bf16.mxu1 %v1636_v53 }
  0x64   :  { %1162 = vmatmul.mubr.bf16.vlgmr.msra.gmra.mrb[8].mxu1 %v294_v55 }
  0x65   :  { %1525 = vmatpush3.bf16.msra.mxu1 %v1637_v57  ;;  %1241 = vmatprep.mubr.bf16.mxu1 %v343_v59 }
  0x66   :  { %1526 = vmatprep.subr.bf16.mxu1 %v1639_v58 }
  0x69   :  { %1527 = vmatpush3.bf16.msra.mxu1 %v1640_v56 }
  0x6a   :  { %1528 = vmatprep.subr.bf16.mxu1 %v1642_v62 }
  0x6b   :  { %10 = vsyncpa [#allocation4], 0  ;;  %v1646_v4 = vld [vmem:[%s2109_s1 + $0x298] sm:$0xff]   ;;  %1264 = vmatpush1.bf16.msra.mxu0 %v1647_v2  ;;  %v1648_v5 = vld [vmem:[%s2109_s1 + $0x2e0] sm:$0xff]   ;;  %v327_v17 = vrot.slane %v1960_v36, %v1795_v35  ;;  %v342_v18 = vcombine.high %v1966_v38, %v1966_v38  ;;  %v244_v35 = vsub.s32 0, %v1774_v24  ;;  %vm1289_vm1 = vcmask 8192  }
  0x6c   :  { %v1650_v6 = vld [vmem:[%s2109_s1 + $0x340] sm:$0xff]   ;;  %1265 = vmatprep.subr.bf16.mxu0 %v1684_v3  ;;  %v1651_v8 = vld [vmem:[%s2109_s1 + $0x2e8] sm:$0xff]   ;;  %v1654_v11 = vld [vmem:[%s2109_s1 + $0x2f0] sm:$0xff]  }
  0x6d   :  { %1529 = vmatpush3.bf16.msra.mxu1 %v1643_v0  ;;  %v1649_v7 = vld [vmem:[%s2109_s1 + $0x2a0] sm:$0xff]   ;;  %v1653_v9 = vld [vmem:[%s2109_s1 + $0x348] sm:$0xff]   ;;  %v1656_v12 = vld [vmem:[%s2109_s1 + $0x350] sm:$0xff]  }
  0x6e   :  { %1530 = vmatprep.subr.bf16.mxu1 %v1645_v1  ;;  %v1652_v10 = vld [vmem:[%s2109_s1 + $0x2a8] sm:$0xff]   ;;  %v1655_v13 = vld [vmem:[%s2109_s1 + $0x2b0] sm:$0xff]   ;;  %v1657_v14 = vld [vmem:[%s2109_s1 + $0x2f8] sm:$0xff]  }
  0x6f   :  { %1266 = vmatpush1.bf16.msra.mxu0 %v1650_v6  ;;  %v1659_v15 = vld [vmem:[%s2109_s1 + $0x358] sm:$0xff]  }
  0x70   :  { %1267 = vmatprep.subr.bf16.mxu0 %v1684_v3  ;;  %v1658_v16 = vld [vmem:[%s2109_s1 + $0x2b8] sm:$0xff]   ;;  %s1686_s1 = smov [#allocation3]  }
  0x71   :  { %1531 = vmatpush3.bf16.msra.mxu1 %v1646_v4  ;;  %s1297_s7 = sshll.u32 %s1686_s1, 4  ;;  %s1298_s7 = int_to_ptr.vmem [resolvable:$true] %s1297_s7 }
  0x72   :  { %1532 = vmatprep.subr.bf16.mxu1 %v1648_v5  ;;  %s1660_s8 = scalar_lea.vmem %s1298_s7, 16  ;;  %s1664_s9 = scalar_lea.vmem %s1298_s7, 32 }
  0x73   :  { %1268 = vmatpush1.bf16.msra.mxu0 %v1653_v9  ;;  %p1661_p0 = scmp.ne.s32.totalorder %s1298_s7, %s1660_s8  ;;  %p1665_p1 = scmp.lt.s32.totalorder %s1298_s7, %s1298_s7 }
  0x74   :  { %1269 = vmatprep.subr.bf16.mxu0 %v1684_v3  ;;  %p1666_p2 = scmp.lt.s32.totalorder %s1664_s9, %s1660_s8 }
  0x75   :  { %1533 = vmatpush3.bf16.msra.mxu1 %v1649_v7 }
  0x76   :  { %1534 = vmatprep.subr.bf16.mxu1 %v1651_v8  ;;  %p1667_p3 = por %p1666_p2, %p1665_p1 }
  0x77   :  { %1270 = vmatpush1.bf16.msra.mxu0 %v1656_v12 }
  0x78   :  { %1271 = vmatprep.subr.bf16.mxu0 %v1684_v3  ;;  %p1668_p4 = pnand %p1667_p3, %p1661_p0 }
  0x79   :  { %1535 = vmatpush3.bf16.msra.mxu1 %v1652_v10 }
  0x7a   :  { %1536 = vmatprep.subr.bf16.mxu1 %v1654_v11 }
  0x7b   :  { %1272 = vmatpush1.bf16.msra.mxu0 %v1659_v15 }
  0x7d   :  { %1537 = vmatpush3.bf16.msra.mxu1 %v1655_v13 }
  0x7e   :  { %1538 = vmatprep.subr.bf16.mxu1 %v1657_v14  ;;  %1282 = vmatmul.mubr.bf16.vlgmr.msra.gmra.mrb[8].mxu0 %v327_v17 }
  0x81   :  { %1539 = vmatpush3.bf16.msra.mxu1 %v1658_v16 }
  0x84   :  { %1242 = vmatmul.mubr.bf16.vlgmr.msra.gmra.mrb[12].mxu1 %v342_v18 }
  0xb2   :  { %v240_v29 = vpop.permute.xlu0 %239 }
  0xb3   :  { %v245_v30 = vrot.slane %v240_v29, %v244_v35 }
  0xf7   :  { %v1430_v19 = vpop.f32.mrb[0].mxu1 }
  0xf8   :  { %v1431_v20 = vpop.f32.mrb[1].mxu1 }
  0xf9   :  { %v1432_v21 = vadd.f32 %v1431_v20, %v1430_v19  ;;  %v1433_v3 = vpop.f32.mrb[2].mxu1  ;;  %v1474_v23 = vpop.f32.mrb[0].mxu0 }
  0xfa   :  { %v1434_v22 = vpop.f32.mrb[3].mxu1  ;;  %v1475_v25 = vpop.f32.mrb[1].mxu0 }
  0xfb   :  { %v1476_v26 = vadd.f32 %v1475_v25, %v1474_v23  ;;  %v1477_v27 = vpop.f32.mrb[2].mxu0  ;;  %v1044_v33 = vadd.f32 %v1432_v21, %v245_v30 }
  0xfc   :  { %v1478_v28 = vpop.f32.mrb[3].mxu0 }
 0x117   :  { %v1452_v31 = vpop.f32.mrb[4].mxu1 }
 0x118   :  { %v1453_v32 = vpop.f32.mrb[5].mxu1 }
 0x119   :  { %v1454_v34 = vadd.f32 %v1453_v32, %v1452_v31  ;;  %v1455_v36 = vpop.f32.mrb[6].mxu1  ;;  %v1518_v40 = vpop.f32.mrb[4].mxu0 }
 0x11a   :  { %v1456_v37 = vpop.f32.mrb[7].mxu1  ;;  %v1519_v41 = vpop.f32.mrb[5].mxu0 }
 0x11b   :  { %v1084_v38 = vadd.f32 %v1454_v34, %v1044_v33  ;;  %v1520_v42 = vadd.f32 %v1519_v41, %v1518_v40  ;;  %v1521_v43 = vpop.f32.mrb[6].mxu0 }
 0x11c   :  { %v1522_v44 = vpop.f32.mrb[7].mxu0 }
 0x11d   :  { %v1124_v39 = vadd.f32 %v1476_v26, %v1084_v38 }
 0x137   :  { %v1496_v45 = vpop.f32.mrb[8].mxu1 }
 0x138   :  { %v1497_v46 = vpop.f32.mrb[9].mxu1 }
 0x139   :  { %v1498_v47 = vadd.f32 %v1497_v46, %v1496_v45  ;;  %v1499_v48 = vpop.f32.mrb[10].mxu1 }
 0x13a   :  { %v1500_v24 = vpop.f32.mrb[11].mxu1 }
 0x13b   :  { %v1164_v49 = vadd.f32 %v1498_v47, %v1124_v39 }
 0x13d   :  { %v1204_v50 = vadd.f32 %v1520_v42, %v1164_v49 }
 0x151   :  { %v1283_v51 = vpop.f32.mrb[8].mxu0 }
 0x152   :  { %v1285_v52 = vpop.f32.mrb[9].mxu0 }
 0x153   :  { %v1286_v53 = vpop.f32.mrb[10].mxu0 }
 0x154   :  { %v1287_v55 = vpop.f32.mrb[11].mxu0 }
 0x157   :  { %v1540_v54 = vpop.f32.mrb[12].mxu1 }
 0x158   :  { %v1541_v57 = vpop.f32.mrb[13].mxu1 }
 0x159   :  { %v1542_v58 = vadd.f32 %v1541_v57, %v1540_v54  ;;  %v1543_v59 = vpop.f32.mrb[14].mxu1 }
 0x15a   :  { %v1544_v60 = vpop.f32.mrb[15].mxu1 }
 0x15b   :  { %v1244_v61 = vadd.f32 %v1542_v58, %v1204_v50 }
 0x15d   :  { %v1284_v56 = vadd.f32 %v1283_v51, %v1244_v61 }
 0x15f   :  { %1290 = vst.msk [vmem:[#allocation3] sm:$0x1] %vm1289_vm1, %v1284_v56 }
 0x160   :  { %1671 = shalt.err (!%p1668_p4)
}
 0x161   :  { %s1672_s12 = scalar_lea.hbm %s2111_s3, 16 }
 0x162   :  { %p1673_p5 = scmp.ne.s32.totalorder %s2111_s3, %s1672_s12  ;;  %p1676_p6 = scmp.lt.u32.totalorder %s1672_s12, %s2111_s3 }
 0x164   :  { %p1678_p7 = pnand %p1676_p6, %p1673_p5 }
 0x166   :  { %1681 = shalt.err (!%p1678_p7)
}
 0x167   :  { %1300 = dma.vmem_to_hbm [thread:$0]  %s1298_s7, 16, %s2111_s3, [#allocation4]  }
 0x168   :  { %1682 = dma.done.wait [#allocation4], 16  }
 0x169   :  { %1683 = vsyncadd [#allocation4], 4294967280 }
 0x16a   :  { %1304 = vsyncpa [#allocation4], 1 }

</bundles_post_ra>
